<compile_context>
chip_gen: v5e
topology: v5e:2x2
jax: 0.10.0
libtpu: 0.0.40
codegen_flags: <defaults>
</compile_context>

<pallas_src>
import numpy as np
import jax
import jax.numpy as jnp
from jax.experimental import pallas as pl
from jax.experimental.pallas import tpu as pltpu


# ----------------------------------------------------------------------------
# Model hyper-parameters (synthetic, deterministic)
# ----------------------------------------------------------------------------
B, C, H, W = 2, 4, 16, 16          # input x: (B, C, H, W)
S = 4                              # number of steerable-pyramid bands
CS = C * S                         # flattened pyramid channels (= c*S + s)
L = 8                              # latent channels
HW = H * W                         # flattened spatial axis (lane axis, 256)
BC = B * C                         # batch-folded image rows            (8)
BCS = B * CS                       # batch-folded pyramid rows          (32)
BL = B * L                         # batch-folded latent rows           (16)

# --- fixed steerable-pyramid band filters (first-derivative steering) -------
_gx = np.array([[-1.0, 0.0, 1.0],
                [-2.0, 0.0, 2.0],
                [-1.0, 0.0, 1.0]], dtype=np.float32) / 8.0
_gy = _gx.T
_thetas = np.pi * np.arange(S, dtype=np.float32) / S
PYR_FILT = np.stack(
    [np.cos(t) * _gx + np.sin(t) * _gy for t in _thetas]).astype(np.float32)
PYR_FILT[np.abs(PYR_FILT) < 1e-7] = 0.0          # make "zero" taps exact zeros
# synthesis (recompose) filters: flipped band filters, averaged over bands
REC_FILT = (PYR_FILT[:, ::-1, ::-1] / float(S)).astype(np.float32)


def _build_constant_banks():
    """Constant helper tensors for the fused kernel (batch folded into rows).

    perm: (BCS, S*BC) 0/1 permutation taking band-major stacked rows
          (s*BC + b*C + c) to (b*CS + c*S + s) order -> one MXU matmul
          replaces the old per-row slice/concat assembly.
    wr  : (3, 3, BCS, 1) per-(dy,dx) row weights for recompose — row
          b*CS + c*S + s gets REC_FILT[s, dy, dx]; broadcast along lanes.
    rsum: (BC, BCS) 0/1 matrix summing the S bands of each (b, c) row
          (band reduction runs on the idle MXU: (BC,BCS)@(BCS,HW)).
    """
    perm = np.zeros((BCS, S * BC), np.float32)
    wr = np.zeros((3, 3, BCS, 1), np.float32)
    rsum = np.zeros((BC, BCS), np.float32)
    for b in range(B):
        for c in range(C):
            for s in range(S):
                r = b * CS + c * S + s
                perm[r, s * BC + b * C + c] = 1.0
                rsum[b * C + c, r] = 1.0
                wr[:, :, r, 0] = REC_FILT[s]
    return perm, wr, rsum


PERM_NP, WR_BANK_NP, RSUM_NP = _build_constant_banks()


# ----------------------------------------------------------------------------
# In-kernel helpers: circular 3x3 taps on the flattened (row-major) H*W axis.
# Rolls act along axis=1 (lanes) of a (rows, HW) array, i.e. per image row,
# so folding the batch into the sublane axis never mixes images.
# ----------------------------------------------------------------------------
def _col_shift_taps(v):
    """v: (rows, HW).  Taps shifted by dx = -1, 0, +1 along W with circular
    wrap *within each image row* (row-major flattened layout)."""
    rows = v.shape[0]
    wi = jax.lax.broadcasted_iota(jnp.int32, (rows, HW), 1) % W
    vp = jnp.where(wi == W - 1,
                   jnp.roll(v, W - 1, axis=1), jnp.roll(v, -1, axis=1))
    vm = jnp.where(wi == 0,
                   jnp.roll(v, -(W - 1), axis=1), jnp.roll(v, 1, axis=1))
    return vm, v, vp


def _row_shift(v, dy):
    """Circular shift by dy rows of the underlying (H, W) image; on the
    flattened lane axis this is an exact roll by -dy*W (no fix-up needed)."""
    if dy == 0:
        return v
    return jnp.roll(v, -dy * W, axis=1)


# ----------------------------------------------------------------------------
# The fused kernel (single invocation, whole batch resident in VMEM)
# ----------------------------------------------------------------------------
def fused_vae_kernel(x_ref, eps_ref, wenc_ref, benc_ref, wdec_ref, bdec_ref,
                     perm_ref, wr_ref, rsum_ref,
                     pyr_ref, dec_ref, rec_ref, mu_ref, lv_ref, z_ref):
    # -------- steerable-pyramid analysis: (BC, HW) -> (BCS, HW) -------------
    x = x_ref[...]                                       # (8, 256)
    xm, x0, xp = _col_shift_taps(x)                      # shared across bands

    bands = []
    for s in range(S):
        band = None
        for iy in range(3):
            acc = None
            for ix, tap in enumerate((xm, x0, xp)):
                wgt = float(PYR_FILT[s, iy, ix])
                if wgt == 0.0:                           # trace-time pruning
                    continue
                term = wgt * tap
                acc = term if acc is None else acc + term
            if acc is None:
                continue
            acc = _row_shift(acc, iy - 1)
            band = acc if band is None else band + acc
        bands.append(band)                               # (BC, 256)

    # stack bands as full blocks, then reorder rows to (b, c, s) on the MXU
    stacked = jnp.concatenate(bands, axis=0)             # (S*BC, 256)
    P = jnp.dot(perm_ref[...], stacked,
                preferred_element_type=jnp.float32)      # (BCS, 256)
    pyr_ref[...] = P                                     # lane-dense store

    # -------- encoder (batched 1x1 conv as ONE block-diag MXU matmul) -------
    # W_enc_blk rows are ordered [all mu rows (b, l)] then [all log_var rows],
    # so mu / log_var are contiguous, vreg-aligned sublane slices of h.
    h = jnp.dot(wenc_ref[...], P,
                preferred_element_type=jnp.float32) + benc_ref[...]  # (2BL,256)
    mu = h[:BL, :]
    lv = h[BL:, :]
    mu_ref[...] = mu
    lv_ref[...] = lv
    z = eps_ref[...] * jnp.exp(0.5 * lv) + mu            # exp runs on the EUP
    z_ref[...] = z

    # -------- decoder (batched 1x1 conv as ONE block-diag MXU matmul) -------
    dec = jnp.dot(wdec_ref[...], z,
                  preferred_element_type=jnp.float32) + bdec_ref[...]  # (BCS,256)
    dec_ref[...] = dec

    # -------- pyramid recomposition: (BCS, HW) -> (BC, HW) ------------------
    dm, d0, dp = _col_shift_taps(dec)                    # taps hoisted: once
    q = None
    for iy in range(3):
        acc = None
        for ix, tap in enumerate((dm, d0, dp)):
            if not np.any(REC_FILT[:, iy, ix]):          # trace-time pruning
                continue
            term = wr_ref[iy, ix] * tap                  # (BCS,1) row weights
            acc = term if acc is None else acc + term
        if acc is None:
            continue
        acc = _row_shift(acc, iy - 1)
        q = acc if q is None else q + acc
    # sum the S bands of each (b, c) row on the MXU: (BC,BCS)@(BCS,HW)
    rec_ref[...] = jnp.dot(rsum_ref[...], q,
                           preferred_element_type=jnp.float32)


# ----------------------------------------------------------------------------
# Wrapper: VAEPyramid.forward
# ----------------------------------------------------------------------------
def _block_diag(w, nb):
    """(o, i) weight -> (nb*o, nb*i) block-diagonal (row/col order (b, o/i))."""
    o, i = w.shape
    eye = jnp.eye(nb, dtype=w.dtype)
    return (eye[:, None, :, None] * w[None, :, None, :]).reshape(nb * o, nb * i)


def vae_pyramid_forward(x, params, eps):
    xf = x.reshape(BC, HW)                   # metadata-only reshape
    epsf = eps.reshape(BL, HW)               # metadata-only reshape

    w_enc = params["w_enc"]                  # (2L, CS)
    b_enc = params["b_enc"]                  # (2L,)
    w_dec = params["w_dec"]                  # (CS, L)
    b_dec = params["b_dec"]                  # (CS,)

    # batched block-diagonal weights (tiny constants w.r.t. the data path)
    wenc_blk = jnp.concatenate([_block_diag(w_enc[:L], B),     # mu rows first
                                _block_diag(w_enc[L:], B)], axis=0)   # (2BL,BCS)
    benc_blk = jnp.concatenate([jnp.tile(b_enc[:L], B),
                                jnp.tile(b_enc[L:], B)]).reshape(2 * BL, 1)
    wdec_blk = _block_diag(w_dec, B)                            # (BCS, BL)
    bdec_blk = jnp.tile(b_dec, B).reshape(BCS, 1)

    perm = jnp.asarray(PERM_NP)
    wr = jnp.asarray(WR_BANK_NP)
    rsum = jnp.asarray(RSUM_NP)

    f32 = jnp.float32
    vmem = pl.BlockSpec(memory_space=pltpu.MemorySpace.VMEM)   # whole array
    outs = pl.pallas_call(
        fused_vae_kernel,
        out_shape=(
            jax.ShapeDtypeStruct((BCS, HW), f32),    # pyramid_output rows
            jax.ShapeDtypeStruct((BCS, HW), f32),    # pyramid_decoded rows
            jax.ShapeDtypeStruct((BC, HW), f32),     # reconstructed_x rows
            jax.ShapeDtypeStruct((BL, HW), f32),     # mu rows
            jax.ShapeDtypeStruct((BL, HW), f32),     # log_var rows
            jax.ShapeDtypeStruct((BL, HW), f32),     # z rows
        ),
        in_specs=[vmem] * 9,
        out_specs=[vmem] * 6,
    )(xf, epsf, wenc_blk, benc_blk, wdec_blk, bdec_blk, perm, wr, rsum)

    pyr_rows, dec_rows, rec_rows, mu_rows, lv_rows, z_rows = outs
    # all reshapes below are metadata-only (split leading/trailing dims)
    pyramid_output = pyr_rows.reshape(B, C, S, H, W)
    pyramid_decoded = dec_rows.reshape(B, C, S, H, W)
    reconstructed_x = rec_rows.reshape(B, C, H, W)
    mu = mu_rows.reshape(B, L, H, W)
    log_var = lv_rows.reshape(B, L, H, W)
    z = z_rows.reshape(B, L, H, W)
    return pyramid_output, pyramid_decoded, reconstructed_x, mu, log_var, z


def init_params(key):
    k1, k2 = jax.random.split(key)
    return {
        # PyTorch 1x1-Conv2d-style (out_channels, in_channels) weights
        "w_enc": jax.random.normal(k1, (2 * L, CS), jnp.float32) / np.sqrt(CS),
        "b_enc": jnp.zeros((2 * L,), jnp.float32),
        "w_dec": jax.random.normal(k2, (CS, L), jnp.float32) / np.sqrt(L),
        "b_dec": jnp.zeros((CS,), jnp.float32),
    }


# ----------------------------------------------------------------------------
# Pure-JAX reference (independent 2-D roll formulation) for a numerical check
# ----------------------------------------------------------------------------
def _conv_bank2d(img, filt):
    out = jnp.zeros_like(img)
    for iy in range(3):
        for ix in range(3):
            wgt = float(filt[iy, ix])
            if wgt == 0.0:
                continue
            tap = jnp.roll(jnp.roll(img, -(iy - 1), axis=1), -(ix - 1), axis=2)
            out = out + wgt * tap
    return out


def _reference_forward(x, params, eps):
    hp = jax.lax.Precision.HIGHEST
    xf = x.reshape(B * C, H, W)
    pyr = jnp.stack([_conv_bank2d(xf, PYR_FILT[s]) for s in range(S)], axis=1)
    pyramid_output = pyr.reshape(B, C, S, H, W)
    pr = pyramid_output.reshape(B, CS, H, W)
    h = jnp.einsum("oc,bchw->bohw", params["w_enc"], pr, precision=hp)
    h = h + params["b_enc"][None, :, None, None]
    mu, lv = h[:, :L], h[:, L:]
    z = eps * jnp.exp(0.5 * lv) + mu
    dec = jnp.einsum("ol,blhw->bohw", params["w_dec"], z, precision=hp)
    dec = dec + params["b_dec"][None, :, None, None]
    pyramid_decoded = dec.reshape(B, C, S, H, W)
    decf = dec.reshape(B * C, S, H, W)
    rec = jnp.zeros((B * C, H, W), jnp.float32)
    for s in range(S):
        rec = rec + _conv_bank2d(decf[:, s], REC_FILT[s])
    reconstructed_x = rec.reshape(B, C, H, W)
    return pyramid_output, pyramid_decoded, reconstructed_x, mu, lv, z


if __name__ == "__main__":
    key = jax.random.PRNGKey(0)
    kx, kp, ke = jax.random.split(key, 3)

    x = jax.random.normal(kx, (B, C, H, W), jnp.float32)
    params = init_params(kp)
    # replaces tch.randn_like(std): standard-normal noise, same layout as z
    eps = jax.random.normal(ke, (B, L, H, W), jnp.float32)

    outs = jax.block_until_ready(jax.jit(vae_pyramid_forward)(x, params, eps))
    pyramid_output, pyramid_decoded, reconstructed_x, mu, log_var, z = outs

    assert pyramid_output.shape == (B, C, S, H, W)
    assert pyramid_decoded.shape == (B, C, S, H, W)
    assert reconstructed_x.shape == (B, C, H, W)
    assert mu.shape == (B, L, H, W) and log_var.shape == (B, L, H, W)
    assert z.shape == (B, L, H, W)

    refs = jax.block_until_ready(jax.jit(_reference_forward)(x, params, eps))
    for got, want in zip(outs, refs):
        np.testing.assert_allclose(np.asarray(got), np.asarray(want),
                                   rtol=2e-2, atol=2e-2)

    print("KERNEL_OK")
</pallas_src>

<mosaic_0001>
module attributes {stable_mosaic.version = 11 : i64} {
  func.func @fused_vae_kernel(%arg0: memref<8x256xf32, #tpu.memory_space<vmem>>, %arg1: memref<16x256xf32, #tpu.memory_space<vmem>>, %arg2: memref<32x32xf32, #tpu.memory_space<vmem>>, %arg3: memref<32x1xf32, #tpu.memory_space<vmem>>, %arg4: memref<32x16xf32, #tpu.memory_space<vmem>>, %arg5: memref<32x1xf32, #tpu.memory_space<vmem>>, %arg6: memref<32x32xf32, #tpu.memory_space<vmem>>, %arg7: memref<3x3x32x1xf32, #tpu.memory_space<vmem>>, %arg8: memref<8x32xf32, #tpu.memory_space<vmem>>, %arg9: memref<32x256xf32, #tpu.memory_space<vmem>>, %arg10: memref<32x256xf32, #tpu.memory_space<vmem>>, %arg11: memref<8x256xf32, #tpu.memory_space<vmem>>, %arg12: memref<16x256xf32, #tpu.memory_space<vmem>>, %arg13: memref<16x256xf32, #tpu.memory_space<vmem>>, %arg14: memref<16x256xf32, #tpu.memory_space<vmem>>) attributes {dimension_semantics = [], scalar_prefetch = 0 : i64, scratch_operands = 0 : i64, tpu.core_type = #tpu.core_type<tc>} {
    %c0 = arith.constant 0 : index
    %c0_0 = arith.constant 0 : index
    %0 = vector.load %arg0[%c0, %c0_0] : memref<8x256xf32, #tpu.memory_space<vmem>>, vector<8x256xf32>
    %1 = tpu.iota {dimensions = array<i32: 1>} : vector<8x256xi32>
    %c16_i32 = arith.constant 16 : i32
    %c0_i32 = arith.constant 0 : i32
    %2 = arith.cmpi eq, %c16_i32, %c0_i32 : i32
    %c1_i32 = arith.constant 1 : i32
    %3 = arith.select %2, %c1_i32, %c16_i32 : i32
    %4 = vector.broadcast %3 : i32 to vector<8x256xi32>
    %5 = arith.remsi %1, %4 : vector<8x256xi32>
    %c0_i32_1 = arith.constant 0 : i32
    %6 = vector.broadcast %c0_i32_1 : i32 to vector<8x256xi32>
    %7 = arith.cmpi ne, %5, %6 : vector<8x256xi32>
    %c0_i32_2 = arith.constant 0 : i32
    %8 = vector.broadcast %c0_i32_2 : i32 to vector<8x256xi32>
    %9 = arith.cmpi slt, %5, %8 : vector<8x256xi32>
    %c0_i32_3 = arith.constant 0 : i32
    %10 = arith.cmpi slt, %3, %c0_i32_3 : i32
    %11 = vector.broadcast %10 : i1 to vector<8x256xi1>
    %12 = vector.broadcast %11 : vector<8x256xi1> to vector<8x256xi1>
    %13 = arith.xori %9, %12 : vector<8x256xi1>
    %14 = arith.andi %13, %7 : vector<8x256xi1>
    %15 = vector.broadcast %3 : i32 to vector<8x256xi32>
    %16 = arith.addi %5, %15 : vector<8x256xi32>
    %17 = arith.select %14, %16, %5 : vector<8x256xi1>, vector<8x256xi32>
    %c15_i32 = arith.constant 15 : i32
    %18 = vector.broadcast %c15_i32 : i32 to vector<8x256xi32>
    %19 = arith.cmpi eq, %17, %18 : vector<8x256xi32>
    %20 = vector.extract_strided_slice %0 {offsets = [0, 241], sizes = [8, 15], strides = [1, 1]} : vector<8x256xf32> to vector<8x15xf32>
    %21 = vector.extract_strided_slice %0 {offsets = [0, 0], sizes = [8, 241], strides = [1, 1]} : vector<8x256xf32> to vector<8x241xf32>
    %22 = tpu.concatenate %20, %21 in 1 : vector<8x15xf32>, vector<8x241xf32> -> vector<8x256xf32>
    %23 = vector.extract_strided_slice %0 {offsets = [0, 1], sizes = [8, 255], strides = [1, 1]} : vector<8x256xf32> to vector<8x255xf32>
    %24 = vector.extract_strided_slice %0 {offsets = [0, 0], sizes = [8, 1], strides = [1, 1]} : vector<8x256xf32> to vector<8x1xf32>
    %25 = tpu.concatenate %23, %24 in 1 : vector<8x255xf32>, vector<8x1xf32> -> vector<8x256xf32>
    %26 = arith.select %19, %22, %25 : vector<8x256xi1>, vector<8x256xf32>
    %c0_i32_4 = arith.constant 0 : i32
    %27 = vector.broadcast %c0_i32_4 : i32 to vector<8x256xi32>
    %28 = arith.cmpi eq, %17, %27 : vector<8x256xi32>
    %29 = vector.extract_strided_slice %0 {offsets = [0, 15], sizes = [8, 241], strides = [1, 1]} : vector<8x256xf32> to vector<8x241xf32>
    %30 = vector.extract_strided_slice %0 {offsets = [0, 0], sizes = [8, 15], strides = [1, 1]} : vector<8x256xf32> to vector<8x15xf32>
    %31 = tpu.concatenate %29, %30 in 1 : vector<8x241xf32>, vector<8x15xf32> -> vector<8x256xf32>
    %32 = vector.extract_strided_slice %0 {offsets = [0, 255], sizes = [8, 1], strides = [1, 1]} : vector<8x256xf32> to vector<8x1xf32>
    %33 = vector.extract_strided_slice %0 {offsets = [0, 0], sizes = [8, 255], strides = [1, 1]} : vector<8x256xf32> to vector<8x255xf32>
    %34 = tpu.concatenate %32, %33 in 1 : vector<8x1xf32>, vector<8x255xf32> -> vector<8x256xf32>
    %35 = arith.select %28, %31, %34 : vector<8x256xi1>, vector<8x256xf32>
    %cst = arith.constant -1.250000e-01 : f32
    %36 = vector.broadcast %cst : f32 to vector<8x256xf32>
    %37 = arith.mulf %36, %35 : vector<8x256xf32>
    %cst_5 = arith.constant 1.250000e-01 : f32
    %38 = vector.broadcast %cst_5 : f32 to vector<8x256xf32>
    %39 = arith.mulf %38, %26 : vector<8x256xf32>
    %40 = arith.addf %37, %39 : vector<8x256xf32>
    %41 = vector.extract_strided_slice %40 {offsets = [0, 240], sizes = [8, 16], strides = [1, 1]} : vector<8x256xf32> to vector<8x16xf32>
    %42 = vector.extract_strided_slice %40 {offsets = [0, 0], sizes = [8, 240], strides = [1, 1]} : vector<8x256xf32> to vector<8x240xf32>
    %43 = tpu.concatenate %41, %42 in 1 : vector<8x16xf32>, vector<8x240xf32> -> vector<8x256xf32>
    %cst_6 = arith.constant -2.500000e-01 : f32
    %44 = vector.broadcast %cst_6 : f32 to vector<8x256xf32>
    %45 = arith.mulf %44, %35 : vector<8x256xf32>
    %cst_7 = arith.constant 2.500000e-01 : f32
    %46 = vector.broadcast %cst_7 : f32 to vector<8x256xf32>
    %47 = arith.mulf %46, %26 : vector<8x256xf32>
    %48 = arith.addf %45, %47 : vector<8x256xf32>
    %49 = arith.addf %43, %48 : vector<8x256xf32>
    %cst_8 = arith.constant -1.250000e-01 : f32
    %50 = vector.broadcast %cst_8 : f32 to vector<8x256xf32>
    %51 = arith.mulf %50, %35 : vector<8x256xf32>
    %cst_9 = arith.constant 1.250000e-01 : f32
    %52 = vector.broadcast %cst_9 : f32 to vector<8x256xf32>
    %53 = arith.mulf %52, %26 : vector<8x256xf32>
    %54 = arith.addf %51, %53 : vector<8x256xf32>
    %55 = vector.extract_strided_slice %54 {offsets = [0, 16], sizes = [8, 240], strides = [1, 1]} : vector<8x256xf32> to vector<8x240xf32>
    %56 = vector.extract_strided_slice %54 {offsets = [0, 0], sizes = [8, 16], strides = [1, 1]} : vector<8x256xf32> to vector<8x16xf32>
    %57 = tpu.concatenate %55, %56 in 1 : vector<8x240xf32>, vector<8x16xf32> -> vector<8x256xf32>
    %58 = arith.addf %49, %57 : vector<8x256xf32>
    %cst_10 = arith.constant -0.176776692 : f32
    %59 = vector.broadcast %cst_10 : f32 to vector<8x256xf32>
    %60 = arith.mulf %59, %35 : vector<8x256xf32>
    %cst_11 = arith.constant -0.176776692 : f32
    %61 = vector.broadcast %cst_11 : f32 to vector<8x256xf32>
    %62 = arith.mulf %61, %0 : vector<8x256xf32>
    %63 = arith.addf %60, %62 : vector<8x256xf32>
    %64 = vector.extract_strided_slice %63 {offsets = [0, 240], sizes = [8, 16], strides = [1, 1]} : vector<8x256xf32> to vector<8x16xf32>
    %65 = vector.extract_strided_slice %63 {offsets = [0, 0], sizes = [8, 240], strides = [1, 1]} : vector<8x256xf32> to vector<8x240xf32>
    %66 = tpu.concatenate %64, %65 in 1 : vector<8x16xf32>, vector<8x240xf32> -> vector<8x256xf32>
    %cst_12 = arith.constant -0.176776692 : f32
    %67 = vector.broadcast %cst_12 : f32 to vector<8x256xf32>
    %68 = arith.mulf %67, %35 : vector<8x256xf32>
    %cst_13 = arith.constant 0.176776692 : f32
    %69 = vector.broadcast %cst_13 : f32 to vector<8x256xf32>
    %70 = arith.mulf %69, %26 : vector<8x256xf32>
    %71 = arith.addf %68, %70 : vector<8x256xf32>
    %72 = arith.addf %66, %71 : vector<8x256xf32>
    %cst_14 = arith.constant 0.176776692 : f32
    %73 = vector.broadcast %cst_14 : f32 to vector<8x256xf32>
    %74 = arith.mulf %73, %0 : vector<8x256xf32>
    %cst_15 = arith.constant 0.176776692 : f32
    %75 = vector.broadcast %cst_15 : f32 to vector<8x256xf32>
    %76 = arith.mulf %75, %26 : vector<8x256xf32>
    %77 = arith.addf %74, %76 : vector<8x256xf32>
    %78 = vector.extract_strided_slice %77 {offsets = [0, 16], sizes = [8, 240], strides = [1, 1]} : vector<8x256xf32> to vector<8x240xf32>
    %79 = vector.extract_strided_slice %77 {offsets = [0, 0], sizes = [8, 16], strides = [1, 1]} : vector<8x256xf32> to vector<8x16xf32>
    %80 = tpu.concatenate %78, %79 in 1 : vector<8x240xf32>, vector<8x16xf32> -> vector<8x256xf32>
    %81 = arith.addf %72, %80 : vector<8x256xf32>
    %cst_16 = arith.constant -0.124999993 : f32
    %82 = vector.broadcast %cst_16 : f32 to vector<8x256xf32>
    %83 = arith.mulf %82, %35 : vector<8x256xf32>
    %cst_17 = arith.constant -2.500000e-01 : f32
    %84 = vector.broadcast %cst_17 : f32 to vector<8x256xf32>
    %85 = arith.mulf %84, %0 : vector<8x256xf32>
    %86 = arith.addf %83, %85 : vector<8x256xf32>
    %cst_18 = arith.constant -1.250000e-01 : f32
    %87 = vector.broadcast %cst_18 : f32 to vector<8x256xf32>
    %88 = arith.mulf %87, %26 : vector<8x256xf32>
    %89 = arith.addf %86, %88 : vector<8x256xf32>
    %90 = vector.extract_strided_slice %89 {offsets = [0, 240], sizes = [8, 16], strides = [1, 1]} : vector<8x256xf32> to vector<8x16xf32>
    %91 = vector.extract_strided_slice %89 {offsets = [0, 0], sizes = [8, 240], strides = [1, 1]} : vector<8x256xf32> to vector<8x240xf32>
    %92 = tpu.concatenate %90, %91 in 1 : vector<8x16xf32>, vector<8x240xf32> -> vector<8x256xf32>
    %cst_19 = arith.constant 1.250000e-01 : f32
    %93 = vector.broadcast %cst_19 : f32 to vector<8x256xf32>
    %94 = arith.mulf %93, %35 : vector<8x256xf32>
    %cst_20 = arith.constant 2.500000e-01 : f32
    %95 = vector.broadcast %cst_20 : f32 to vector<8x256xf32>
    %96 = arith.mulf %95, %0 : vector<8x256xf32>
    %97 = arith.addf %94, %96 : vector<8x256xf32>
    %cst_21 = arith.constant 0.124999993 : f32
    %98 = vector.broadcast %cst_21 : f32 to vector<8x256xf32>
    %99 = arith.mulf %98, %26 : vector<8x256xf32>
    %100 = arith.addf %97, %99 : vector<8x256xf32>
    %101 = vector.extract_strided_slice %100 {offsets = [0, 16], sizes = [8, 240], strides = [1, 1]} : vector<8x256xf32> to vector<8x240xf32>
    %102 = vector.extract_strided_slice %100 {offsets = [0, 0], sizes = [8, 16], strides = [1, 1]} : vector<8x256xf32> to vector<8x16xf32>
    %103 = tpu.concatenate %101, %102 in 1 : vector<8x240xf32>, vector<8x16xf32> -> vector<8x256xf32>
    %104 = arith.addf %92, %103 : vector<8x256xf32>
    %cst_22 = arith.constant -0.176776692 : f32
    %105 = vector.broadcast %cst_22 : f32 to vector<8x256xf32>
    %106 = arith.mulf %105, %0 : vector<8x256xf32>
    %cst_23 = arith.constant -0.176776692 : f32
    %107 = vector.broadcast %cst_23 : f32 to vector<8x256xf32>
    %108 = arith.mulf %107, %26 : vector<8x256xf32>
    %109 = arith.addf %106, %108 : vector<8x256xf32>
    %110 = vector.extract_strided_slice %109 {offsets = [0, 240], sizes = [8, 16], strides = [1, 1]} : vector<8x256xf32> to vector<8x16xf32>
    %111 = vector.extract_strided_slice %109 {offsets = [0, 0], sizes = [8, 240], strides = [1, 1]} : vector<8x256xf32> to vector<8x240xf32>
    %112 = tpu.concatenate %110, %111 in 1 : vector<8x16xf32>, vector<8x240xf32> -> vector<8x256xf32>
    %cst_24 = arith.constant 0.176776692 : f32
    %113 = vector.broadcast %cst_24 : f32 to vector<8x256xf32>
    %114 = arith.mulf %113, %35 : vector<8x256xf32>
    %cst_25 = arith.constant -0.176776692 : f32
    %115 = vector.broadcast %cst_25 : f32 to vector<8x256xf32>
    %116 = arith.mulf %115, %26 : vector<8x256xf32>
    %117 = arith.addf %114, %116 : vector<8x256xf32>
    %118 = arith.addf %112, %117 : vector<8x256xf32>
    %cst_26 = arith.constant 0.176776692 : f32
    %119 = vector.broadcast %cst_26 : f32 to vector<8x256xf32>
    %120 = arith.mulf %119, %35 : vector<8x256xf32>
    %cst_27 = arith.constant 0.176776692 : f32
    %121 = vector.broadcast %cst_27 : f32 to vector<8x256xf32>
    %122 = arith.mulf %121, %0 : vector<8x256xf32>
    %123 = arith.addf %120, %122 : vector<8x256xf32>
    %124 = vector.extract_strided_slice %123 {offsets = [0, 16], sizes = [8, 240], strides = [1, 1]} : vector<8x256xf32> to vector<8x240xf32>
    %125 = vector.extract_strided_slice %123 {offsets = [0, 0], sizes = [8, 16], strides = [1, 1]} : vector<8x256xf32> to vector<8x16xf32>
    %126 = tpu.concatenate %124, %125 in 1 : vector<8x240xf32>, vector<8x16xf32> -> vector<8x256xf32>
    %127 = arith.addf %118, %126 : vector<8x256xf32>
    %128 = tpu.concatenate %58, %81, %104, %127 in 0 : vector<8x256xf32>, vector<8x256xf32>, vector<8x256xf32>, vector<8x256xf32> -> vector<32x256xf32>
    %c0_28 = arith.constant 0 : index
    %c0_29 = arith.constant 0 : index
    %129 = vector.load %arg6[%c0_28, %c0_29] : memref<32x32xf32, #tpu.memory_space<vmem>>, vector<32x32xf32>
    %cst_30 = arith.constant dense<0.000000e+00> : vector<32x256xf32>
    %130 = tpu.matmul %129, %128, %cst_30 {dimension_numbers = #tpu.dot_dimension_numbers<[1], [0], [0], [1], [0, 0, 1, 1], [], []>} : vector<32x32xf32>, vector<32x256xf32>, vector<32x256xf32> -> vector<32x256xf32>
    %c0_31 = arith.constant 0 : index
    %c0_32 = arith.constant 0 : index
    %131 = vector.load %arg9[%c0_31, %c0_32] : memref<32x256xf32, #tpu.memory_space<vmem>>, vector<32x256xf32>
    tpu.vector_store %arg9[%c0_31, %c0_32], %130 {strides = array<i32>} : memref<32x256xf32, #tpu.memory_space<vmem>>, vector<32x256xf32>,
    %c0_33 = arith.constant 0 : index
    %c0_34 = arith.constant 0 : index
    %132 = vector.load %arg2[%c0_33, %c0_34] : memref<32x32xf32, #tpu.memory_space<vmem>>, vector<32x32xf32>
    %cst_35 = arith.constant dense<0.000000e+00> : vector<32x256xf32>
    %133 = tpu.matmul %132, %130, %cst_35 {dimension_numbers = #tpu.dot_dimension_numbers<[1], [0], [0], [1], [0, 0, 1, 1], [], []>} : vector<32x32xf32>, vector<32x256xf32>, vector<32x256xf32> -> vector<32x256xf32>
    %c0_36 = arith.constant 0 : index
    %c0_37 = arith.constant 0 : index
    %134 = vector.load %arg3[%c0_36, %c0_37] : memref<32x1xf32, #tpu.memory_space<vmem>>, vector<32x1xf32>
    %135 = vector.broadcast %134 : vector<32x1xf32> to vector<32x256xf32>
    %136 = arith.addf %133, %135 : vector<32x256xf32>
    %137 = vector.extract_strided_slice %136 {offsets = [0, 0], sizes = [16, 256], strides = [1, 1]} : vector<32x256xf32> to vector<16x256xf32>
    %138 = vector.extract_strided_slice %136 {offsets = [16, 0], sizes = [16, 256], strides = [1, 1]} : vector<32x256xf32> to vector<16x256xf32>
    %c0_38 = arith.constant 0 : index
    %c0_39 = arith.constant 0 : index
    %139 = vector.load %arg12[%c0_38, %c0_39] : memref<16x256xf32, #tpu.memory_space<vmem>>, vector<16x256xf32>
    tpu.vector_store %arg12[%c0_38, %c0_39], %137 {strides = array<i32>} : memref<16x256xf32, #tpu.memory_space<vmem>>, vector<16x256xf32>,
    %c0_40 = arith.constant 0 : index
    %c0_41 = arith.constant 0 : index
    %140 = vector.load %arg13[%c0_40, %c0_41] : memref<16x256xf32, #tpu.memory_space<vmem>>, vector<16x256xf32>
    tpu.vector_store %arg13[%c0_40, %c0_41], %138 {strides = array<i32>} : memref<16x256xf32, #tpu.memory_space<vmem>>, vector<16x256xf32>,
    %c0_42 = arith.constant 0 : index
    %c0_43 = arith.constant 0 : index
    %141 = vector.load %arg1[%c0_42, %c0_43] : memref<16x256xf32, #tpu.memory_space<vmem>>, vector<16x256xf32>
    %cst_44 = arith.constant 5.000000e-01 : f32
    %142 = vector.broadcast %cst_44 : f32 to vector<16x256xf32>
    %143 = arith.mulf %142, %138 : vector<16x256xf32>
    %144 = math.exp %143 : vector<16x256xf32>
    %145 = arith.mulf %141, %144 : vector<16x256xf32>
    %146 = arith.addf %145, %137 : vector<16x256xf32>
    %c0_45 = arith.constant 0 : index
    %c0_46 = arith.constant 0 : index
    %147 = vector.load %arg14[%c0_45, %c0_46] : memref<16x256xf32, #tpu.memory_space<vmem>>, vector<16x256xf32>
    tpu.vector_store %arg14[%c0_45, %c0_46], %146 {strides = array<i32>} : memref<16x256xf32, #tpu.memory_space<vmem>>, vector<16x256xf32>,
    %c0_47 = arith.constant 0 : index
    %c0_48 = arith.constant 0 : index
    %148 = vector.load %arg4[%c0_47, %c0_48] : memref<32x16xf32, #tpu.memory_space<vmem>>, vector<32x16xf32>
    %cst_49 = arith.constant dense<0.000000e+00> : vector<32x256xf32>
    %149 = tpu.matmul %148, %146, %cst_49 {dimension_numbers = #tpu.dot_dimension_numbers<[1], [0], [0], [1], [0, 0, 1, 1], [], []>} : vector<32x16xf32>, vector<16x256xf32>, vector<32x256xf32> -> vector<32x256xf32>
    %c0_50 = arith.constant 0 : index
    %c0_51 = arith.constant 0 : index
    %150 = vector.load %arg5[%c0_50, %c0_51] : memref<32x1xf32, #tpu.memory_space<vmem>>, vector<32x1xf32>
    %151 = vector.broadcast %150 : vector<32x1xf32> to vector<32x256xf32>
    %152 = arith.addf %149, %151 : vector<32x256xf32>
    %c0_52 = arith.constant 0 : index
    %c0_53 = arith.constant 0 : index
    %153 = vector.load %arg10[%c0_52, %c0_53] : memref<32x256xf32, #tpu.memory_space<vmem>>, vector<32x256xf32>
    tpu.vector_store %arg10[%c0_52, %c0_53], %152 {strides = array<i32>} : memref<32x256xf32, #tpu.memory_space<vmem>>, vector<32x256xf32>,
    %154 = tpu.iota {dimensions = array<i32: 1>} : vector<32x256xi32>
    %c16_i32_54 = arith.constant 16 : i32
    %c0_i32_55 = arith.constant 0 : i32
    %155 = arith.cmpi eq, %c16_i32_54, %c0_i32_55 : i32
    %c1_i32_56 = arith.constant 1 : i32
    %156 = arith.select %155, %c1_i32_56, %c16_i32_54 : i32
    %157 = vector.broadcast %156 : i32 to vector<32x256xi32>
    %158 = arith.remsi %154, %157 : vector<32x256xi32>
    %c0_i32_57 = arith.constant 0 : i32
    %159 = vector.broadcast %c0_i32_57 : i32 to vector<32x256xi32>
    %160 = arith.cmpi ne, %158, %159 : vector<32x256xi32>
    %c0_i32_58 = arith.constant 0 : i32
    %161 = vector.broadcast %c0_i32_58 : i32 to vector<32x256xi32>
    %162 = arith.cmpi slt, %158, %161 : vector<32x256xi32>
    %c0_i32_59 = arith.constant 0 : i32
    %163 = arith.cmpi slt, %156, %c0_i32_59 : i32
    %164 = vector.broadcast %163 : i1 to vector<32x256xi1>
    %165 = vector.broadcast %164 : vector<32x256xi1> to vector<32x256xi1>
    %166 = arith.xori %162, %165 : vector<32x256xi1>
    %167 = arith.andi %166, %160 : vector<32x256xi1>
    %168 = vector.broadcast %156 : i32 to vector<32x256xi32>
    %169 = arith.addi %158, %168 : vector<32x256xi32>
    %170 = arith.select %167, %169, %158 : vector<32x256xi1>, vector<32x256xi32>
    %c15_i32_60 = arith.constant 15 : i32
    %171 = vector.broadcast %c15_i32_60 : i32 to vector<32x256xi32>
    %172 = arith.cmpi eq, %170, %171 : vector<32x256xi32>
    %173 = vector.extract_strided_slice %152 {offsets = [0, 241], sizes = [32, 15], strides = [1, 1]} : vector<32x256xf32> to vector<32x15xf32>
    %174 = vector.extract_strided_slice %152 {offsets = [0, 0], sizes = [32, 241], strides = [1, 1]} : vector<32x256xf32> to vector<32x241xf32>
    %175 = tpu.concatenate %173, %174 in 1 : vector<32x15xf32>, vector<32x241xf32> -> vector<32x256xf32>
    %176 = vector.extract_strided_slice %152 {offsets = [0, 1], sizes = [32, 255], strides = [1, 1]} : vector<32x256xf32> to vector<32x255xf32>
    %177 = vector.extract_strided_slice %152 {offsets = [0, 0], sizes = [32, 1], strides = [1, 1]} : vector<32x256xf32> to vector<32x1xf32>
    %178 = tpu.concatenate %176, %177 in 1 : vector<32x255xf32>, vector<32x1xf32> -> vector<32x256xf32>
    %179 = arith.select %172, %175, %178 : vector<32x256xi1>, vector<32x256xf32>
    %c0_i32_61 = arith.constant 0 : i32
    %180 = vector.broadcast %c0_i32_61 : i32 to vector<32x256xi32>
    %181 = arith.cmpi eq, %170, %180 : vector<32x256xi32>
    %182 = vector.extract_strided_slice %152 {offsets = [0, 15], sizes = [32, 241], strides = [1, 1]} : vector<32x256xf32> to vector<32x241xf32>
    %183 = vector.extract_strided_slice %152 {offsets = [0, 0], sizes = [32, 15], strides = [1, 1]} : vector<32x256xf32> to vector<32x15xf32>
    %184 = tpu.concatenate %182, %183 in 1 : vector<32x241xf32>, vector<32x15xf32> -> vector<32x256xf32>
    %185 = vector.extract_strided_slice %152 {offsets = [0, 255], sizes = [32, 1], strides = [1, 1]} : vector<32x256xf32> to vector<32x1xf32>
    %186 = vector.extract_strided_slice %152 {offsets = [0, 0], sizes = [32, 255], strides = [1, 1]} : vector<32x256xf32> to vector<32x255xf32>
    %187 = tpu.concatenate %185, %186 in 1 : vector<32x1xf32>, vector<32x255xf32> -> vector<32x256xf32>
    %188 = arith.select %181, %184, %187 : vector<32x256xi1>, vector<32x256xf32>
    %c0_62 = arith.constant 0 : index
    %c0_63 = arith.constant 0 : index
    %c0_64 = arith.constant 0 : index
    %c0_65 = arith.constant 0 : index
    %189 = vector.load %arg7[%c0_62, %c0_63, %c0_64, %c0_65] : memref<3x3x32x1xf32, #tpu.memory_space<vmem>>, vector<1x1x32x1xf32>
    %190 = vector.shape_cast %189 : vector<1x1x32x1xf32> to vector<32x1xf32>
    %191 = vector.broadcast %190 : vector<32x1xf32> to vector<32x256xf32>
    %192 = arith.mulf %191, %188 : vector<32x256xf32>
    %c0_66 = arith.constant 0 : index
    %c1 = arith.constant 1 : index
    %c0_67 = arith.constant 0 : index
    %c0_68 = arith.constant 0 : index
    %193 = vector.load %arg7[%c0_66, %c1, %c0_67, %c0_68] : memref<3x3x32x1xf32, #tpu.memory_space<vmem>>, vector<1x1x32x1xf32>
    %194 = vector.shape_cast %193 : vector<1x1x32x1xf32> to vector<32x1xf32>
    %195 = vector.broadcast %194 : vector<32x1xf32> to vector<32x256xf32>
    %196 = arith.mulf %195, %152 : vector<32x256xf32>
    %197 = arith.addf %192, %196 : vector<32x256xf32>
    %c0_69 = arith.constant 0 : index
    %c2 = arith.constant 2 : index
    %c0_70 = arith.constant 0 : index
    %c0_71 = arith.constant 0 : index
    %198 = vector.load %arg7[%c0_69, %c2, %c0_70, %c0_71] : memref<3x3x32x1xf32, #tpu.memory_space<vmem>>, vector<1x1x32x1xf32>
    %199 = vector.shape_cast %198 : vector<1x1x32x1xf32> to vector<32x1xf32>
    %200 = vector.broadcast %199 : vector<32x1xf32> to vector<32x256xf32>
    %201 = arith.mulf %200, %179 : vector<32x256xf32>
    %202 = arith.addf %197, %201 : vector<32x256xf32>
    %203 = vector.extract_strided_slice %202 {offsets = [0, 240], sizes = [32, 16], strides = [1, 1]} : vector<32x256xf32> to vector<32x16xf32>
    %204 = vector.extract_strided_slice %202 {offsets = [0, 0], sizes = [32, 240], strides = [1, 1]} : vector<32x256xf32> to vector<32x240xf32>
    %205 = tpu.concatenate %203, %204 in 1 : vector<32x16xf32>, vector<32x240xf32> -> vector<32x256xf32>
    %c1_72 = arith.constant 1 : index
    %c0_73 = arith.constant 0 : index
    %c0_74 = arith.constant 0 : index
    %c0_75 = arith.constant 0 : index
    %206 = vector.load %arg7[%c1_72, %c0_73, %c0_74, %c0_75] : memref<3x3x32x1xf32, #tpu.memory_space<vmem>>, vector<1x1x32x1xf32>
    %207 = vector.shape_cast %206 : vector<1x1x32x1xf32> to vector<32x1xf32>
    %208 = vector.broadcast %207 : vector<32x1xf32> to vector<32x256xf32>
    %209 = arith.mulf %208, %188 : vector<32x256xf32>
    %c1_76 = arith.constant 1 : index
    %c2_77 = arith.constant 2 : index
    %c0_78 = arith.constant 0 : index
    %c0_79 = arith.constant 0 : index
    %210 = vector.load %arg7[%c1_76, %c2_77, %c0_78, %c0_79] : memref<3x3x32x1xf32, #tpu.memory_space<vmem>>, vector<1x1x32x1xf32>
    %211 = vector.shape_cast %210 : vector<1x1x32x1xf32> to vector<32x1xf32>
    %212 = vector.broadcast %211 : vector<32x1xf32> to vector<32x256xf32>
    %213 = arith.mulf %212, %179 : vector<32x256xf32>
    %214 = arith.addf %209, %213 : vector<32x256xf32>
    %215 = arith.addf %205, %214 : vector<32x256xf32>
    %c2_80 = arith.constant 2 : index
    %c0_81 = arith.constant 0 : index
    %c0_82 = arith.constant 0 : index
    %c0_83 = arith.constant 0 : index
    %216 = vector.load %arg7[%c2_80, %c0_81, %c0_82, %c0_83] : memref<3x3x32x1xf32, #tpu.memory_space<vmem>>, vector<1x1x32x1xf32>
    %217 = vector.shape_cast %216 : vector<1x1x32x1xf32> to vector<32x1xf32>
    %218 = vector.broadcast %217 : vector<32x1xf32> to vector<32x256xf32>
    %219 = arith.mulf %218, %188 : vector<32x256xf32>
    %c2_84 = arith.constant 2 : index
    %c1_85 = arith.constant 1 : index
    %c0_86 = arith.constant 0 : index
    %c0_87 = arith.constant 0 : index
    %220 = vector.load %arg7[%c2_84, %c1_85, %c0_86, %c0_87] : memref<3x3x32x1xf32, #tpu.memory_space<vmem>>, vector<1x1x32x1xf32>
    %221 = vector.shape_cast %220 : vector<1x1x32x1xf32> to vector<32x1xf32>
    %222 = vector.broadcast %221 : vector<32x1xf32> to vector<32x256xf32>
    %223 = arith.mulf %222, %152 : vector<32x256xf32>
    %224 = arith.addf %219, %223 : vector<32x256xf32>
    %c2_88 = arith.constant 2 : index
    %c2_89 = arith.constant 2 : index
    %c0_90 = arith.constant 0 : index
    %c0_91 = arith.constant 0 : index
    %225 = vector.load %arg7[%c2_88, %c2_89, %c0_90, %c0_91] : memref<3x3x32x1xf32, #tpu.memory_space<vmem>>, vector<1x1x32x1xf32>
    %226 = vector.shape_cast %225 : vector<1x1x32x1xf32> to vector<32x1xf32>
    %227 = vector.broadcast %226 : vector<32x1xf32> to vector<32x256xf32>
    %228 = arith.mulf %227, %179 : vector<32x256xf32>
    %229 = arith.addf %224, %228 : vector<32x256xf32>
    %230 = vector.extract_strided_slice %229 {offsets = [0, 16], sizes = [32, 240], strides = [1, 1]} : vector<32x256xf32> to vector<32x240xf32>
    %231 = vector.extract_strided_slice %229 {offsets = [0, 0], sizes = [32, 16], strides = [1, 1]} : vector<32x256xf32> to vector<32x16xf32>
    %232 = tpu.concatenate %230, %231 in 1 : vector<32x240xf32>, vector<32x16xf32> -> vector<32x256xf32>
    %233 = arith.addf %215, %232 : vector<32x256xf32>
    %c0_92 = arith.constant 0 : index
    %c0_93 = arith.constant 0 : index
    %234 = vector.load %arg8[%c0_92, %c0_93] : memref<8x32xf32, #tpu.memory_space<vmem>>, vector<8x32xf32>
    %cst_94 = arith.constant dense<0.000000e+00> : vector<8x256xf32>
    %235 = tpu.matmul %234, %233, %cst_94 {dimension_numbers = #tpu.dot_dimension_numbers<[1], [0], [0], [1], [0, 0, 1, 1], [], []>} : vector<8x32xf32>, vector<32x256xf32>, vector<8x256xf32> -> vector<8x256xf32>
    %c0_95 = arith.constant 0 : index
    %c0_96 = arith.constant 0 : index
    %236 = vector.load %arg11[%c0_95, %c0_96] : memref<8x256xf32, #tpu.memory_space<vmem>>, vector<8x256xf32>
    tpu.vector_store %arg11[%c0_95, %c0_96], %235 {strides = array<i32>} : memref<8x256xf32, #tpu.memory_space<vmem>>, vector<8x256xf32>,
    return
  }
}

</mosaic_0001>

<bundles_post_ra>
// kernel: tile.18
= control target key start
LH: loop header
LB: loop body
LE: loop exit
PB: predicated region body
PF: predicated region fallthrough
CT: control target
= control target key end

     0   :  { %s22_s0 = inlined_call_operand.vmem [shape: f32[8], index: 0, kind: input, shape index: {}]   ;;  %s23_s1 = inlined_call_operand.vmem [shape: f32[2,8], index: 1, kind: output, shape index: {}]  }
   0x1   :  { %v4_v0 = vld [vmem:[%s22_s0] ss:$0 sm:$0xff] }
   0x2   :  { %5 = vst [vmem:[%s23_s1] sm:$0x3] %v4_v0 }

// kernel: tile.19
= control target key start
LH: loop header
LB: loop body
LE: loop exit
PB: predicated region body
PF: predicated region fallthrough
CT: control target
= control target key end

     0   :  { %vm7_vm0 = vcmask 64512   ;;  %vm13_vm1 = vcmask 130112   ;;  %s39_s0 = inlined_call_operand.vmem [shape: f32[2,8], index: 0, kind: input, shape index: {}]   ;;  %s40_s1 = inlined_call_operand.vmem [shape: f32[16], index: 1, kind: output, shape index: {}]  }
   0x1   :  { %v4_v0 = vld [vmem:[%s39_s0] sm:$0x3]  ;;  %s22_s0 = smov 8  }
   0x2   :  { %5 = vst [vmem:[#allocation1] sm:$0x3] %v4_v0 }
   0x9   :  { %v10_v1 = vld [vmem:[#allocation1 + $0x1] sm:$0x1]   ;;  %v6_v2 = vld [vmem:[#allocation1] sm:$0x1]  }
   0xa   :  { %11 = vrot.lane.b32.xlu0 %v10_v1, %s22_s0  ;;  %8 = vst.msk [vmem:[#allocation0] sm:$0x1] %vm7_vm0, %v6_v2  }
  0x7c   :  { %v12_v3 = vpop.permute.xlu0 %11  }
  0x7d   :  { %14 = vst.msk [vmem:[#allocation0] sm:$0x1] %vm13_vm1, %v12_v3  }
  0x84   :  { %v17_v4 = vld [vmem:[#allocation0] sm:$0x1] }
  0x85   :  { %20 = vst [vmem:[%s40_s1] sm:$0x1] %v17_v4 }

// kernel: tile.28
= control target key start
LH: loop header
LB: loop body
LE: loop exit
PB: predicated region body
PF: predicated region fallthrough
CT: control target
= control target key end

     0   :  { %s22_s0 = inlined_call_operand.vmem [shape: f32[16], index: 0, kind: input, shape index: {}]   ;;  %s23_s1 = inlined_call_operand.vmem [shape: f32[2,16], index: 1, kind: output, shape index: {}]  }
   0x1   :  { %v4_v0 = vld [vmem:[%s22_s0] ss:$0 sm:$0xff] }
   0x2   :  { %5 = vst [vmem:[%s23_s1] sm:$0x3] %v4_v0 }

// kernel: tile.0
= control target key start
LH: loop header
LB: loop body
LE: loop exit
PB: predicated region body
PF: predicated region fallthrough
CT: control target
= control target key end

     0   :  { %s130_s8 = smov 127   ;;  %s131_s9 = smov 123   ;;  %vm7_vm0 = vcmask 7168   ;;  %s221_s0 = inlined_call_operand.vmem [shape: f32[2,16], index: 0, kind: input, shape index: {}]   ;;  %s222_s1 = inlined_call_operand.vmem [shape: f32[32,1], index: 1, kind: output, shape index: {}]  }
   0x1   :  { %v4_v0 = vld [vmem:[%s221_s0] sm:$0x3]  ;;  %s129_s0 = smov 125   ;;  %s132_s10 = smov 124  }
   0x2   :  { %5 = vst [vmem:[#allocation0] sm:$0x3] %v4_v0  ;;  %s133_s11 = smov 126   ;;  %s134_s12 = smov 122  }
   0x3   :  { %s135_s13 = smov 120   ;;  %s136_s14 = smov 121  }
   0x4   :  { %s137_s15 = smov 119   ;;  %s138_s16 = smov 117  }
   0x5   :  { %s139_s17 = smov 118   ;;  %s140_s18 = smov 116  }
   0x6   :  { %s141_s19 = smov 114   ;;  %s142_s20 = smov 115  }
   0x7   :  { %s143_s21 = smov 113  }
   0x9   :  { %v21_v1 = vld [vmem:[#allocation0] sm:$0x3]  }
   0xa   :  { %v9_v2 = vld [vmem:[#allocation0] sm:$0x3]   ;;  %22 = vrot.lane.b32.xlu1 %v21_v1, %s129_s0 }
   0xb   :  { %10 = vrot.lane.b32.xlu0 %v9_v2, %s130_s8  ;;  %v33_v3 = vld [vmem:[#allocation0] sm:$0x3]  }
   0xc   :  { %34 = vrot.lane.b32.xlu2 %v33_v3, %s131_s9  ;;  %v27_v4 = vld [vmem:[#allocation0] sm:$0x3]  }
   0xd   :  { %v15_v5 = vld [vmem:[#allocation0] sm:$0x3]  }
   0xe   :  { %v39_v6 = vld [vmem:[#allocation0] sm:$0x3]  }
   0xf   :  { %v51_v7 = vld [vmem:[#allocation0] sm:$0x3]  }
  0x10   :  { %v45_v8 = vld [vmem:[#allocation0] sm:$0x3]  }
  0x11   :  { %v57_v9 = vld [vmem:[#allocation0] sm:$0x3]  }
  0x12   :  { %28 = vrot.lane.b32.xlu1 %v27_v4, %s132_s10  ;;  %v69_v10 = vld [vmem:[#allocation0] sm:$0x3]  }
  0x13   :  { %16 = vrot.lane.b32.xlu0 %v15_v5, %s133_s11  ;;  %v63_v11 = vld [vmem:[#allocation0] sm:$0x3]  }
  0x14   :  { %40 = vrot.lane.b32.xlu2 %v39_v6, %s134_s12  ;;  %v75_v12 = vld [vmem:[#allocation0] sm:$0x3]  }
  0x15   :  { %v87_v13 = vld [vmem:[#allocation0] sm:$0x3]  }
  0x16   :  { %v81_v14 = vld [vmem:[#allocation0] sm:$0x3]  }
  0x17   :  { %v93_v15 = vld [vmem:[#allocation0] sm:$0x3]  }
  0x18   :  { %v6_v21 = vld [vmem:[#allocation0] sm:$0x3]  }
  0x19   :  { %8 = vst.msk [vmem:[%s222_s1] ss:$16 sm:$0x3] %vm7_vm0, %v6_v21  }
  0x1a   :  { %52 = vrot.lane.b32.xlu1 %v51_v7, %s135_s13 }
  0x1b   :  { %46 = vrot.lane.b32.xlu0 %v45_v8, %s136_s14 }
  0x1c   :  { %58 = vrot.lane.b32.xlu2 %v57_v9, %s137_s15 }
  0x22   :  { %70 = vrot.lane.b32.xlu1 %v69_v10, %s138_s16 }
  0x23   :  { %64 = vrot.lane.b32.xlu0 %v63_v11, %s139_s17 }
  0x24   :  { %76 = vrot.lane.b32.xlu2 %v75_v12, %s140_s18 }
  0x2a   :  { %88 = vrot.lane.b32.xlu1 %v87_v13, %s141_s19 }
  0x2b   :  { %82 = vrot.lane.b32.xlu0 %v81_v14, %s142_s20 }
  0x2c   :  { %94 = vrot.lane.b32.xlu2 %v93_v15, %s143_s21 }
  0x66   :  { %v35_v16 = vpop.permute.xlu2 %34  }
  0x67   :  { %103 = vst.msk [vmem:[%s222_s1 + $0x5] ss:$16 sm:$0x3] %vm7_vm0, %v35_v16  }
  0x6e   :  { %v41_v17 = vpop.permute.xlu2 %40  }
  0x6f   :  { %104 = vst.msk [vmem:[%s222_s1 + $0x6] ss:$16 sm:$0x3] %vm7_vm0, %v41_v17  }
  0x76   :  { %v59_v18 = vpop.permute.xlu2 %58  }
  0x77   :  { %107 = vst.msk [vmem:[%s222_s1 + $0x9] ss:$16 sm:$0x3] %vm7_vm0, %v59_v18  }
  0x7c   :  { %v23_v19 = vpop.permute.xlu1 %22  }
  0x7d   :  { %v11_v20 = vpop.permute.xlu0 %10   ;;  %101 = vst.msk [vmem:[%s222_s1 + $0x3] ss:$16 sm:$0x3] %vm7_vm0, %v23_v19  }
  0x7e   :  { %99 = vst.msk [vmem:[%s222_s1 + $0x1] ss:$16 sm:$0x3] %vm7_vm0, %v11_v20   ;;  %v77_v22 = vpop.permute.xlu2 %76  }
  0x7f   :  { %110 = vst.msk [vmem:[%s222_s1 + $0xc] ss:$16 sm:$0x3] %vm7_vm0, %v77_v22  }
  0x84   :  { %v29_v23 = vpop.permute.xlu1 %28  }
  0x85   :  { %v17_v24 = vpop.permute.xlu0 %16   ;;  %102 = vst.msk [vmem:[%s222_s1 + $0x4] ss:$16 sm:$0x3] %vm7_vm0, %v29_v23  }
  0x86   :  { %100 = vst.msk [vmem:[%s222_s1 + $0x2] ss:$16 sm:$0x3] %vm7_vm0, %v17_v24   ;;  %v95_v25 = vpop.permute.xlu2 %94  }
  0x87   :  { %113 = vst.msk [vmem:[%s222_s1 + $0xf] ss:$16 sm:$0x3] %vm7_vm0, %v95_v25  }
  0x8c   :  { %v53_v26 = vpop.permute.xlu1 %52  }
  0x8d   :  { %v47_v27 = vpop.permute.xlu0 %46   ;;  %106 = vst.msk [vmem:[%s222_s1 + $0x8] ss:$16 sm:$0x3] %vm7_vm0, %v53_v26  }
  0x8e   :  { %105 = vst.msk [vmem:[%s222_s1 + $0x7] ss:$16 sm:$0x3] %vm7_vm0, %v47_v27  }
  0x94   :  { %v71_v28 = vpop.permute.xlu1 %70  }
  0x95   :  { %v65_v29 = vpop.permute.xlu0 %64   ;;  %109 = vst.msk [vmem:[%s222_s1 + $0xb] ss:$16 sm:$0x3] %vm7_vm0, %v71_v28  }
  0x96   :  { %108 = vst.msk [vmem:[%s222_s1 + $0xa] ss:$16 sm:$0x3] %vm7_vm0, %v65_v29  }
  0x9c   :  { %v89_v30 = vpop.permute.xlu1 %88  }
  0x9d   :  { %v83_v31 = vpop.permute.xlu0 %82   ;;  %112 = vst.msk [vmem:[%s222_s1 + $0xe] ss:$16 sm:$0x3] %vm7_vm0, %v89_v30  }
  0x9e   :  { %111 = vst.msk [vmem:[%s222_s1 + $0xd] ss:$16 sm:$0x3] %vm7_vm0, %v83_v31  }

// kernel: vae_pyramid_forward.1
= control target key start
LH: loop header
LB: loop body
LE: loop exit
PB: predicated region body
PF: predicated region fallthrough
CT: control target
= control target key end

     0   :  { %s1323_s17 = smov 15   ;;  %s1324_s18 = smov 127   ;;  %v40_v2 = vlaneseq  ;;  %vm85_vm0 = vcmask 1039360   ;;  %vm76_vm1 = vcmask 121856   ;;  %vm99_vm4 = vcmask 924672   ;;  %s2180_s0 = inlined_call_operand.vmem [shape: f32[8,256], index: 0, kind: input, shape index: {}]   ;;  %s2181_s3 = inlined_call_operand.vmem [shape: f32[32,1], index: 3, kind: input, shape index: {}]   ;;  %s2182_s5 = inlined_call_operand.vmem [shape: f32[32,1], index: 5, kind: input, shape index: {}]   ;;  %s2183_s6 = inlined_call_operand.vmem [shape: f32[32,32], index: 6, kind: input, shape index: {}]   ;;  %s2184_s7 = inlined_call_operand.vmem [shape: f32[3,3,32,1], index: 7, kind: input, shape index: {}]   ;;  %s2185_s9 = inlined_call_operand.vmem [shape: f32[32,256], index: 9, kind: output, shape index: {0}]   ;;  %s2186_s2 = inlined_call_operand.vmem [shape: f32[32,32], index: 2, kind: input, shape index: {}]   ;;  %s2187_s12 = inlined_call_operand.vmem [shape: f32[16,256], index: 12, kind: output, shape index: {3}]   ;;  %s2188_s13 = inlined_call_operand.vmem [shape: f32[16,256], index: 13, kind: output, shape index: {4}]   ;;  %s2189_s1 = inlined_call_operand.vmem [shape: f32[16,256], index: 1, kind: input, shape index: {}]   ;;  %s2190_s14 = inlined_call_operand.vmem [shape: f32[16,256], index: 14, kind: output, shape index: {5}]   ;;  %s2191_s4 = inlined_call_operand.vmem [shape: f32[32,16], index: 4, kind: input, shape index: {}]   ;;  %s2192_s10 = inlined_call_operand.vmem [shape: f32[32,256], index: 10, kind: output, shape index: {1}]   ;;  %s2193_s8 = inlined_call_operand.vmem [shape: f32[8,32], index: 8, kind: input, shape index: {}]   ;;  %s2194_s11 = inlined_call_operand.vmem [shape: f32[8,256], index: 11, kind: output, shape index: {2}]  }
   0x1   :  { %v1408_v0 = vld [vmem:[%s2180_s0 + $0x8] sm:$0xff]  ;;  %v1413_v1 = vld [vmem:[%s2180_s0] sm:$0xff]  ;;  %s1325_s19 = smov 113   ;;  %s1326_s0 = smov 1   ;;  %vm110_vm5 = vcmask 7168   ;;  %vm130_vm8 = vcmask 130048  }
   0x2   :  { %70 = vrot.lane.b32.xlu0 %v1408_v0, %s1323_s17  ;;  %81 = vrot.lane.b32.xlu1 %v1413_v1, %s1324_s18  ;;  %v41_v3 = vand.u32 127, %v40_v2  ;;  %v158_v14 = vmul.f32 -0.17677669, %v1408_v0  ;;  %v157_v15 = vmul.f32 -0.17677669, %v1413_v1  ;;  %s1327_s20 = smov 16  }
   0x3   :  { %95 = vrot.lane.b32.xlu2 %v1413_v1, %s1325_s19  ;;  %v179_v37 = vmul.f32 0.17677669, %v1408_v0  ;;  %v178_v38 = vmul.f32 0.17677669, %v1413_v1  ;;  %s1328_s21 = smov 112   ;;  %v198_v63 = vmul.f32 -0.25, %v1408_v0 }
   0x4   :  { %v42_v4 = vadd.s32 128, %v41_v3  ;;  %v47_v7 = vand.u32 15, %v41_v3  ;;  %vm147_vm9 = vcmask 916480   ;;  %vm279_vm10 = vcmask 261120  }
   0x6   :  { %v54_v8 = vand.u32 15, %v42_v4  ;;  %vm1431_vm2 = vcmp.eq.s32.totalorder %v47_v7, 15  ;;  %vm1457_vm6 = vcmp.eq.s32.totalorder %v47_v7, 0  ;;  %v197_v4 = vmul.f32 -0.25, %v1413_v1 }
   0x8   :  { %vm1435_vm3 = vcmp.eq.s32.totalorder %v54_v8, 15  ;;  %vm1461_vm7 = vcmp.eq.s32.totalorder %v54_v8, 0 }
   0xa   :  { %83 = vrot.lane.b32.xlu1 %v1408_v0, %s1324_s18  ;;  %74 = vrot.lane.b32.xlu0 %v1413_v1, %s1323_s17 }
   0xb   :  { %97 = vrot.lane.b32.xlu2 %v1408_v0, %s1325_s19 }
  0x12   :  { %108 = vrot.lane.b32.xlu1 %v1413_v1, %s1326_s0  ;;  %105 = vrot.lane.b32.xlu0 %v1408_v0, %s1326_s0 }
  0x5d   :  { %v96_v9 = vpop.permute.xlu2 %95 }
  0x65   :  { %v98_v26 = vpop.permute.xlu2 %97 }
  0x66   :  { %v100_v31 = vsel %vm99_vm4, %v96_v9, %v98_v26  ;;  %v104_v32 = vsel %vm99_vm4, %v98_v26, %v96_v9 }
  0x74   :  { %v71_v5 = vpop.permute.xlu0 %70  ;;  %v82_v6 = vpop.permute.xlu1 %81 }
  0x7c   :  { %v84_v12 = vpop.permute.xlu1 %83  ;;  %v75_v13 = vpop.permute.xlu0 %74 }
  0x7d   :  { %v86_v16 = vsel %vm85_vm0, %v82_v6, %v84_v12  ;;  %v90_v17 = vsel %vm85_vm0, %v84_v12, %v82_v6  ;;  %v77_v18 = vsel %vm76_vm1, %v75_v13, %v71_v5  ;;  %v80_v19 = vsel %vm76_vm1, %v71_v5, %v75_v13 }
  0x7e   :  { %v1447_v20 = vsel %vm1431_vm2, %v80_v19, %v86_v16  ;;  %v1451_v21 = vsel %vm1435_vm3, %v77_v18, %v90_v17  ;;  %v219_v13 = vmul.f32 0.25, %v1408_v0 }
  0x7f   :  { %v240_v22 = vmul.f32 -0.17677669, %v1451_v21  ;;  %v239_v23 = vmul.f32 -0.17677669, %v1447_v20  ;;  %v172_v46 = vmul.f32 0.17677669, %v1447_v20 }
  0x80   :  { %v173_v47 = vmul.f32 0.17677669, %v1451_v21  ;;  %v137_v53 = vmul.f32 0.25, %v1447_v20  ;;  %v138_v56 = vmul.f32 0.25, %v1451_v21  ;;  %v120_v58 = vmul.f32 0.125, %v1451_v21 }
  0x81   :  { %v242_v24 = vadd.f32 %v240_v22, %v158_v14  ;;  %v241_v25 = vadd.f32 %v239_v23, %v157_v15  ;;  %v180_v60 = vadd.f32 %v178_v38, %v172_v46  ;;  %v202_v8 = vmul.f32 -0.125, %v1451_v21 }
  0x82   :  { %v119_v9 = vmul.f32 0.125, %v1447_v20  ;;  %v201_v12 = vmul.f32 -0.125, %v1447_v20 }
  0x83   :  { %244 = vrot.lane.b32.xlu2 %v242_v24, %s1327_s20  ;;  %248 = vrot.lane.b32.xlu0 %v241_v25, %s1327_s20  ;;  %v223_v24 = vmul.f32 0.12499999, %v1451_v21  ;;  %v222_v25 = vmul.f32 0.12499999, %v1447_v20 }
  0x84   :  { %v109_v29 = vpop.permute.xlu1 %108  ;;  %v106_v30 = vpop.permute.xlu0 %105 }
  0x85   :  { %v111_v33 = vsel %vm110_vm5, %v109_v29, %v106_v30  ;;  %v114_v34 = vsel %vm110_vm5, %v106_v30, %v109_v29 }
  0x86   :  { %v115_v35 = vsel %vm1457_vm6, %v100_v31, %v114_v34  ;;  %v116_v36 = vsel %vm1461_vm7, %v104_v32, %v111_v33 }
  0x87   :  { %v255_v39 = vmul.f32 0.17677669, %v116_v36  ;;  %v254_v40 = vmul.f32 0.17677669, %v115_v35  ;;  %v156_v41 = vmul.f32 -0.17677669, %v116_v36 }
  0x88   :  { %v155_v42 = vmul.f32 -0.17677669, %v115_v35  ;;  %v135_v52 = vmul.f32 -0.25, %v115_v35  ;;  %v118_v54 = vmul.f32 -0.125, %v116_v36  ;;  %v136_v55 = vmul.f32 -0.25, %v116_v36 }
  0x89   :  { %v261_v43 = vadd.f32 %v255_v39, %v179_v37  ;;  %v260_v44 = vadd.f32 %v254_v40, %v178_v38  ;;  %v160_v45 = vadd.f32 %v158_v14, %v156_v41  ;;  %v256_v48 = vadd.f32 %v254_v40, %v239_v23 }
  0x8a   :  { %v257_v49 = vadd.f32 %v255_v39, %v240_v22  ;;  %v1480_v50 = vadd.f32 %v172_v46, %v155_v42  ;;  %v1482_v51 = vadd.f32 %v173_v47, %v156_v41  ;;  %v1486_v57 = vadd.f32 %v137_v53, %v135_v52 }
  0x8b   :  { %266 = vrot.lane.b32.xlu2 %v261_v43, %s1328_s21  ;;  %264 = vrot.lane.b32.xlu1 %v260_v44, %s1328_s21  ;;  %v1489_v59 = vadd.f32 %v138_v56, %v136_v55  ;;  %v159_v61 = vadd.f32 %v157_v15, %v155_v42  ;;  %v196_v62 = vmul.f32 -0.12499999, %v116_v36  ;;  %v122_v2 = vadd.f32 %v120_v58, %v118_v54 }
  0x8c   :  { %162 = vrot.lane.b32.xlu0 %v160_v45, %s1327_s20  ;;  %v195_v3 = vmul.f32 -0.12499999, %v115_v35  ;;  %v117_v6 = vmul.f32 -0.125, %v115_v35  ;;  %v218_v14 = vmul.f32 0.25, %v1413_v1  ;;  %v217_v17 = vmul.f32 0.125, %v116_v36 }
  0x8d   :  { %v200_v5 = vadd.f32 %v198_v63, %v196_v62  ;;  %v216_v18 = vmul.f32 0.125, %v115_v35  ;;  %v181_v1 = vadd.f32 %v179_v37, %v173_v47  ;;  %v1329_v52 = vmov 0  }
  0x8e   :  { %v199_v7 = vadd.f32 %v197_v4, %v195_v3  ;;  %v121_v16 = vadd.f32 %v119_v9, %v117_v6  ;;  %v221_v22 = vadd.f32 %v219_v13, %v217_v17  ;;  %1313 = vset.pattern.permute.xlu1 %v1329_v52  ;;  %1312 = vset.pattern.permute.xlu0 %v1329_v52  ;;  %v362_v9 = vld [vmem:[%s2181_s3] sm:$0xff] }
  0x8f   :  { %v204_v15 = vadd.f32 %v202_v8, %v200_v5  ;;  %v220_v23 = vadd.f32 %v218_v14, %v216_v18  ;;  %1314 = vset.pattern.permute.xlu2 %v1329_v52  ;;  %v1274_v52 = vld [vmem:[%s2184_s7 + $0x58] sm:$0xff] }
  0x90   :  { %v203_v19 = vadd.f32 %v201_v12, %v199_v7  ;;  %v225_v0 = vadd.f32 %v223_v24, %v221_v22  ;;  %v497_v12 = vld [vmem:[%s2182_s5 + $0x8] sm:$0xff]  ;;  %v275_v22 = vld [vmem:[%s2183_s6] sm:$0xff] }
  0x91   :  { %v224_v26 = vadd.f32 %v222_v25, %v220_v23  ;;  %v767_v23 = vld [vmem:[%s2184_s7 + $0x8] sm:$0xff]  ;;  %v277_v25 = vld [vmem:[%s2183_s6 + $0x10] sm:$0xff] }
  0x92   :  { %v276_v24 = vld [vmem:[%s2183_s6 + $0x8] sm:$0xff] }
  0x93   :  { %184 = vrot.lane.b32.xlu2 %v180_v60, %s1328_s21  ;;  %166 = vrot.lane.b32.xlu1 %v159_v61, %s1327_s20 }
  0x94   :  { %124 = vrot.lane.b32.xlu0 %v122_v2, %s1327_s20 }
  0x9b   :  { %206 = vrot.lane.b32.xlu2 %v204_v15, %s1327_s20  ;;  %128 = vrot.lane.b32.xlu1 %v121_v16, %s1327_s20 }
  0x9c   :  { %210 = vrot.lane.b32.xlu0 %v203_v19, %s1327_s20 }
  0xa3   :  { %230 = vrot.lane.b32.xlu2 %v225_v0, %s1328_s21  ;;  %228 = vrot.lane.b32.xlu1 %v224_v26, %s1328_s21  ;;  %v769_v0 = vld [vmem:[%s2184_s7 + $0x18] sm:$0xff]  ;;  %v768_v26 = vld [vmem:[%s2184_s7 + $0x10] sm:$0xff] }
  0xa4   :  { %186 = vrot.lane.b32.xlu0 %v181_v1, %s1328_s21  ;;  %v1269_v1 = vld [vmem:[%s2184_s7 + $0x30] sm:$0xff] }
  0xab   :  { %145 = vrot.lane.b32.xlu2 %v122_v2, %s1328_s21  ;;  %143 = vrot.lane.b32.xlu1 %v121_v16, %s1328_s21 }
  0xdd   :  { %v245_v29 = vpop.permute.xlu2 %244 }
  0xe5   :  { %v267_v30 = vpop.permute.xlu2 %266 }
  0xed   :  { %v185_v38 = vpop.permute.xlu2 %184 }
  0xf5   :  { %v249_v31 = vpop.permute.xlu0 %248  ;;  %v207_v43 = vpop.permute.xlu2 %206 }
  0xf6   :  { %v250_v21 = vsel %vm130_vm8, %v249_v31, %v245_v29  ;;  %v253_v20 = vsel %vm130_vm8, %v245_v29, %v249_v31  ;;  %v363_v29 = vld [vmem:[%s2181_s3 + $0x8] sm:$0xff]  ;;  %v1290_v31 = vld [vmem:[%s2184_s7 + $0xf8] sm:$0xff] }
  0xf7   :  { %v258_v32 = vadd.f32 %v256_v48, %v253_v20  ;;  %v259_v33 = vadd.f32 %v257_v49, %v250_v21  ;;  %v364_v48 = vld [vmem:[%s2181_s3 + $0x10] sm:$0xff]  ;;  %v365_v49 = vld [vmem:[%s2181_s3 + $0x18] sm:$0xff]  ;;  %373 = vperm.xlu2 %1314, %v363_v29   ;;  %v496_v21 = vld [vmem:[%s2182_s5] sm:$0xff] }
  0xf8   :  { %378 = vperm.xlu1 %1313, %v364_v48   ;;  %383 = vperm.xlu0 %1312, %v365_v49   ;;  %v1273_v20 = vld [vmem:[%s2184_s7 + $0x50] sm:$0xff]  ;;  %v1283_v49 = vld [vmem:[%s2184_s7 + $0xc0] sm:$0xff] }
  0xfd   :  { %v265_v34 = vpop.permute.xlu1 %264  ;;  %v231_v47 = vpop.permute.xlu2 %230 }
  0xfe   :  { %v268_v35 = vsel %vm147_vm9, %v265_v34, %v267_v30  ;;  %v272_v36 = vsel %vm147_vm9, %v267_v30, %v265_v34  ;;  %v163_v37 = vpop.permute.xlu0 %162  ;;  %v1286_v30 = vld [vmem:[%s2184_s7 + $0xd8] sm:$0xff] }
  0xff   :  { %v273_v39 = vadd.f32 %v268_v35, %v258_v32  ;;  %v274_v40 = vadd.f32 %v272_v36, %v259_v33  ;;  %502 = vperm.xlu2 %1314, %v496_v21   ;;  %v1285_v32 = vld [vmem:[%s2184_s7 + $0xd0] sm:$0xff]  ;;  %v499_v33 = vld [vmem:[%s2182_s5 + $0x18] sm:$0xff] }
 0x100   :  { %368 = vperm.xlu1 %1313, %v362_v9   ;;  %507 = vperm.xlu0 %1312, %v497_v12   ;;  %v1294_v34 = vld [vmem:[%s2184_s7 + $0x118] sm:$0xff] }
 0x101   :  { %304 = vmatpush.msra.mxu0 %v273_v39  ;;  %1297 = vmatpush.msra.mxu2 %v273_v39  ;;  %v1284_v39 = vld [vmem:[%s2184_s7 + $0xc8] sm:$0xff] }
 0x102   :  { %333 = vmatpush.msra.mxu1 %v274_v40  ;;  %1301 = vmatpush.msra.mxu3 %v274_v40 }
 0x105   :  { %v167_v41 = vpop.permute.xlu1 %166 }
 0x106   :  { %v125_v42 = vpop.permute.xlu0 %124  ;;  %v171_v46 = vsel %vm130_vm8, %v163_v37, %v167_v41  ;;  %v168_v53 = vsel %vm130_vm8, %v167_v41, %v163_v37  ;;  %v1267_v37 = vld [vmem:[%s2184_s7 + $0x20] sm:$0xff] }
 0x107   :  { %v176_v54 = vadd.f32 %v1480_v50, %v171_v46  ;;  %v177_v50 = vadd.f32 %v1482_v51, %v168_v53  ;;  %v146_v51 = vpop.permute.xlu2 %145  ;;  %517 = vperm.xlu2 %1314, %v499_v33   ;;  %v1271_v46 = vld [vmem:[%s2184_s7 + $0x40] sm:$0xff] }
 0x108   :  { %777 = vperm.xlu0 %1312, %v767_v23   ;;  %v358_v53 = vld [vmem:[%s2186_s2] sm:$0xff] }
 0x10d   :  { %v129_v44 = vpop.permute.xlu1 %128 }
 0x10e   :  { %v211_v45 = vpop.permute.xlu0 %210  ;;  %v131_v6 = vsel %vm130_vm8, %v129_v44, %v125_v42  ;;  %v134_v7 = vsel %vm130_vm8, %v125_v42, %v129_v44  ;;  %v1288_v44 = vld [vmem:[%s2184_s7 + $0xe8] sm:$0xff] }
 0x10f   :  { %v212_v56 = vsel %vm130_vm8, %v211_v45, %v207_v43  ;;  %v215_v58 = vsel %vm130_vm8, %v207_v43, %v211_v45  ;;  %v141_v13 = vadd.f32 %v1486_v57, %v134_v7  ;;  %v142_v14 = vadd.f32 %v1489_v59, %v131_v6  ;;  %v278_v57 = vld [vmem:[%s2183_s6 + $0x18] sm:$0xff]  ;;  %v498_v59 = vld [vmem:[%s2182_s5 + $0x10] sm:$0xff] }
 0x110   :  { %512 = vperm.xlu1 %1313, %v498_v59   ;;  %782 = vperm.xlu0 %1312, %v768_v26   ;;  %v1270_v45 = vld [vmem:[%s2184_s7 + $0x38] sm:$0xff] }
 0x115   :  { %v229_v55 = vpop.permute.xlu1 %228 }
 0x116   :  { %v187_v60 = vpop.permute.xlu0 %186  ;;  %v232_v61 = vsel %vm147_vm9, %v229_v55, %v231_v47  ;;  %v236_v62 = vsel %vm147_vm9, %v231_v47, %v229_v55  ;;  %v1291_v55 = vld [vmem:[%s2184_s7 + $0x100] sm:$0xff] }
 0x117   :  { %v188_v63 = vsel %vm147_vm9, %v185_v38, %v187_v60  ;;  %v192_v2 = vsel %vm147_vm9, %v187_v60, %v185_v38  ;;  %v237_v3 = vadd.f32 %v232_v61, %v215_v58  ;;  %v238_v4 = vadd.f32 %v236_v62, %v212_v56  ;;  %v766_v38 = vld [vmem:[%s2184_s7] sm:$0xff]  ;;  %v1268_v56 = vld [vmem:[%s2184_s7 + $0x28] sm:$0xff]  ;;  %v1282_v60 = vld [vmem:[%s2184_s7 + $0xb8] sm:$0xff] }
 0x118   :  { %v193_v5 = vadd.f32 %v188_v63, %v176_v54  ;;  %v194_v8 = vadd.f32 %v192_v2, %v177_v50  ;;  %787 = vperm.xlu1 %1313, %v769_v0   ;;  %1028 = vperm.xlu0 %1312, %v1286_v30   ;;  %v1292_v54 = vld [vmem:[%s2184_s7 + $0x108] sm:$0xff]  ;;  %v1277_v61 = vld [vmem:[%s2184_s7 + $0x70] sm:$0xff]  ;;  %v1287_v50 = vld [vmem:[%s2184_s7 + $0xe0] sm:$0xff] }
 0x119   :  { %305 = vmatpush.msra.mxu0 %v237_v3  ;;  %1298 = vmatpush.msra.mxu2 %v237_v3  ;;  %v359_v58 = vld [vmem:[%s2186_s2 + $0x8] sm:$0xff]  ;;  %v1289_v62 = vld [vmem:[%s2184_s7 + $0xf0] sm:$0xff]  ;;  %v361_v3 = vld [vmem:[%s2186_s2 + $0x18] sm:$0xff] }
 0x11a   :  { %334 = vmatpush.msra.mxu1 %v238_v4  ;;  %1302 = vmatpush.msra.mxu3 %v238_v4  ;;  %v360_v63 = vld [vmem:[%s2186_s2 + $0x10] sm:$0xff]  ;;  %v1272_v2 = vld [vmem:[%s2184_s7 + $0x48] sm:$0xff] }
 0x11b   :  { %306 = vmatpush.msra.mxu0 %v193_v5  ;;  %1299 = vmatpush.msra.mxu2 %v193_v5  ;;  %v1293_v4 = vld [vmem:[%s2184_s7 + $0x110] sm:$0xff]  ;;  %v1278_v5 = vld [vmem:[%s2184_s7 + $0x78] sm:$0xff] }
 0x11c   :  { %335 = vmatpush.msra.mxu1 %v194_v8  ;;  %1303 = vmatpush.msra.mxu3 %v194_v8 }
 0x11d   :  { %v144_v15 = vpop.permute.xlu1 %143  ;;  %772 = vperm.xlu2 %1314, %v766_v38  }
 0x11e   :  { %v148_v16 = vsel %vm147_vm9, %v144_v15, %v146_v51  ;;  %v152_v17 = vsel %vm147_vm9, %v146_v51, %v144_v15 }
 0x11f   :  { %v153_v18 = vadd.f32 %v148_v16, %v141_v13  ;;  %v154_v19 = vadd.f32 %v152_v17, %v142_v14 }
 0x120   :  { %815 = vperm.xlu1 %1313, %v1269_v1   ;;  %856 = vperm.xlu0 %1312, %v1273_v20   ;;  %v464_v20 = vld [vmem:[%s2189_s1] sm:$0xff] }
 0x121   :  { %307 = vmatpush.msra.mxu0 %v153_v18  ;;  %1300 = vmatpush.msra.mxu2 %v153_v18 }
 0x122   :  { %336 = vmatpush.msra.mxu1 %v154_v19  ;;  %1304 = vmatpush.msra.mxu3 %v154_v19 }
 0x123   :  { %1243 = vmatmul.msk.f32.vlgmr.msra.gmra.mxu0 %vm279_vm10, %v275_v22  ;;  %1247 = vmatmul.msk.f32.vlgmr.msra.gmra.mxu1 %vm279_vm10, %v275_v22 }
 0x124   :  { %1246 = vmatmul.msk.f32.vlgmr.msra.gmra.mxu2 %vm279_vm10, %v278_v57  ;;  %1250 = vmatmul.msk.f32.vlgmr.msra.gmra.mxu3 %vm279_vm10, %v278_v57 }
 0x125   :  { %820 = vperm.xlu2 %1314, %v1270_v45  }
 0x128   :  { %1061 = vperm.xlu1 %1313, %v1290_v31   ;;  %1102 = vperm.xlu0 %1312, %v1294_v34  }
 0x12b   :  { %1244 = vmatmul.msk.f32.gmra.mxu0 %vm279_vm10, %v276_v24  ;;  %1248 = vmatmul.msk.f32.gmra.mxu1 %vm279_vm10, %v276_v24 }
 0x12d   :  { %861 = vperm.xlu2 %1314, %v1274_v52   ;;  %v493_v52 = vld [vmem:[%s2191_s4 + $0x8] sm:$0xff] }
 0x130   :  { %1023 = vperm.xlu1 %1313, %v1285_v32   ;;  %1018 = vperm.xlu0 %1312, %v1284_v39   ;;  %v465_v32 = vld [vmem:[%s2189_s1 + $0x8] sm:$0xff] }
 0x133   :  { %1245 = vmatmul.msk.f32.gmra.mxu0 %vm279_vm10, %v277_v25  ;;  %1249 = vmatmul.msk.f32.gmra.mxu1 %vm279_vm10, %v277_v25 }
 0x135   :  { %810 = vperm.xlu2 %1314, %v1268_v56  }
 0x138   :  { %805 = vperm.xlu1 %1313, %v1267_v37   ;;  %846 = vperm.xlu0 %1312, %v1271_v46  }
 0x13d   :  { %1056 = vperm.xlu2 %1314, %v1289_v62  }
 0x140   :  { %1051 = vperm.xlu1 %1313, %v1288_v44   ;;  %1092 = vperm.xlu0 %1312, %v1292_v54   ;;  %v495_v54 = vld [vmem:[%s2191_s4 + $0x18] sm:$0xff] }
 0x145   :  { %851 = vperm.xlu2 %1314, %v1272_v2  }
 0x148   :  { %1013 = vperm.xlu1 %1313, %v1283_v49   ;;  %979 = vperm.xlu0 %1312, %v1282_v60   ;;  %v492_v49 = vld [vmem:[%s2191_s4] sm:$0xff] }
 0x14d   :  { %1097 = vperm.xlu2 %1314, %v1293_v4  }
 0x150   :  { %1087 = vperm.xlu1 %1313, %v1291_v55  }
 0x151   :  { %v374_v13 = vpop.permute.xlu2 %373 }
 0x155   :  { %1046 = vperm.xlu2 %1314, %v1287_v50  }
 0x158   :  { %941 = vperm.xlu1 %1313, %v1277_v61  }
 0x159   :  { %v503_v55 = vpop.permute.xlu2 %502 }
 0x15d   :  { %946 = vperm.xlu2 %1314, %v1278_v5  }
 0x161   :  { %v518_v56 = vpop.permute.xlu2 %517 }
 0x16a   :  { %v379_v6 = vpop.permute.xlu1 %378  ;;  %v384_v0 = vpop.permute.xlu0 %383 }
 0x172   :  { %v369_v7 = vpop.permute.xlu1 %368  ;;  %v508_v2 = vpop.permute.xlu0 %507 }
 0x1a0   :  { %v309_v35 = vpop.f32.mrf.mxu0  ;;  %v338_v36 = vpop.f32.mrf.mxu1 }
 0x1a1   :  { %350 = vst [vmem:[%s2185_s9] sm:$0xff] %v309_v35 }
 0x1a2   :  { %351 = vst [vmem:[%s2185_s9 + $0x8] sm:$0xff] %v338_v36 }
 0x1a7   :  { %v318_v40 = vpop.f32.mrf.mxu2  ;;  %v347_v41 = vpop.f32.mrf.mxu3 }
 0x1a8   :  { %v312_v42 = vpop.f32.mrf.mxu0  ;;  %v341_v43 = vpop.f32.mrf.mxu1  ;;  %356 = vst [vmem:[%s2185_s9 + $0x30] sm:$0xff] %v318_v40  ;;  %410 = vmatpush.msrb.mxu2 %v318_v40  ;;  %439 = vmatpush.msrb.mxu3 %v347_v41 }
 0x1a9   :  { %352 = vst [vmem:[%s2185_s9 + $0x10] sm:$0xff] %v312_v42 }
 0x1aa   :  { %353 = vst [vmem:[%s2185_s9 + $0x18] sm:$0xff] %v341_v43 }
 0x1ab   :  { %357 = vst [vmem:[%s2185_s9 + $0x38] sm:$0xff] %v347_v41  ;;  %v466_v41 = vld [vmem:[%s2189_s1 + $0x10] sm:$0xff] }
 0x1b0   :  { %v315_v47 = vpop.f32.mrf.mxu0  ;;  %v344_v48 = vpop.f32.mrf.mxu1 }
 0x1b1   :  { %354 = vst [vmem:[%s2185_s9 + $0x20] sm:$0xff] %v315_v47  ;;  %411 = vmatpush.msrb.mxu2 %v315_v47  ;;  %440 = vmatpush.msrb.mxu3 %v344_v48 }
 0x1b2   :  { %355 = vst [vmem:[%s2185_s9 + $0x28] sm:$0xff] %v344_v48 }
 0x1b3   :  { %412 = vmatpush.msrb.mxu2 %v312_v42  ;;  %441 = vmatpush.msrb.mxu3 %v341_v43  ;;  %v467_v42 = vld [vmem:[%s2189_s1 + $0x18] sm:$0xff] }
 0x1b5   :  { %413 = vmatpush.msrb.mxu2 %v309_v35  ;;  %442 = vmatpush.msrb.mxu3 %v338_v36 }
 0x1b6   :  { %1251 = vmatmul.msk.f32.vlgmr.msrb.gmra.mxu2 %vm279_vm10, %v358_v53  ;;  %1255 = vmatmul.msk.f32.vlgmr.msrb.gmra.mxu3 %vm279_vm10, %v358_v53  ;;  %v494_v53 = vld [vmem:[%s2191_s4 + $0x10] sm:$0xff] }
 0x1be   :  { %1252 = vmatmul.msk.f32.gmra.mxu2 %vm279_vm10, %v359_v58  ;;  %1256 = vmatmul.msk.f32.gmra.mxu3 %vm279_vm10, %v359_v58 }
 0x1c6   :  { %1253 = vmatmul.msk.f32.gmra.mxu2 %vm279_vm10, %v360_v63  ;;  %1257 = vmatmul.msk.f32.gmra.mxu3 %vm279_vm10, %v360_v63  ;;  %v1786_v63 = vpop.permute.xlu2 %772 }
 0x1ce   :  { %1254 = vmatmul.msk.f32.gmra.mxu2 %vm279_vm10, %v361_v3  ;;  %1258 = vmatmul.msk.f32.gmra.mxu3 %vm279_vm10, %v361_v3 }
 0x239   :  { %v415_v8 = vpop.f32.mrf.mxu2  ;;  %v444_v9 = vpop.f32.mrf.mxu3 }
 0x23a   :  { %v416_v12 = vadd.f32 %v415_v8, %v369_v7  ;;  %v445_v51 = vadd.f32 %v444_v9, %v369_v7  ;;  %v513_v7 = vpop.permute.xlu1 %512 }
 0x23c   :  { %456 = vst [vmem:[%s2187_s12] sm:$0xff] %v416_v12 }
 0x23d   :  { %457 = vst [vmem:[%s2187_s12 + $0x8] sm:$0xff] %v445_v51 }
 0x241   :  { %v418_v14 = vpop.f32.mrf.mxu2  ;;  %v447_v15 = vpop.f32.mrf.mxu3 }
 0x242   :  { %v419_v16 = vadd.f32 %v418_v14, %v374_v13  ;;  %v448_v17 = vadd.f32 %v447_v15, %v374_v13 }
 0x244   :  { %458 = vst [vmem:[%s2187_s12 + $0x10] sm:$0xff] %v419_v16 }
 0x245   :  { %459 = vst [vmem:[%s2187_s12 + $0x18] sm:$0xff] %v448_v17 }
 0x249   :  { %v421_v18 = vpop.f32.mrf.mxu2  ;;  %v450_v19 = vpop.f32.mrf.mxu3 }
 0x24a   :  { %v422_v22 = vadd.f32 %v421_v18, %v379_v6  ;;  %v451_v57 = vadd.f32 %v450_v19, %v379_v6  ;;  %v1806_v6 = vpop.permute.xlu2 %820  ;;  %v1846_v18 = vpop.permute.xlu1 %787 }
 0x24b   :  { %v1848_v19 = vpop.permute.xlu0 %777 }
 0x24c   :  { %460 = vst [vmem:[%s2188_s13] sm:$0xff] %v422_v22  ;;  %v468_v59 = vmul.f32 0.5, %v422_v22  ;;  %v469_v23 = vmul.f32 0.5, %v451_v57 }
 0x24d   :  { %461 = vst [vmem:[%s2188_s13 + $0x8] sm:$0xff] %v451_v57 }
 0x24e   :  { %v472_v24 = vmul.f32 1.442695, %v468_v59  ;;  %v474_v25 = vmul.f32 1.442695, %v469_v23 }
 0x250   :  { %1315 = vpow2.f32 %v472_v24 }
 0x251   :  { %1317 = vpow2.f32 %v474_v25  ;;  %v424_v26 = vpop.f32.mrf.mxu2  ;;  %v453_v1 = vpop.f32.mrf.mxu3 }
 0x252   :  { %v425_v29 = vadd.f32 %v424_v26, %v384_v0  ;;  %v454_v30 = vadd.f32 %v453_v1, %v384_v0  ;;  %v1826_v14 = vpop.permute.xlu2 %861  ;;  %v1858_v57 = vpop.permute.xlu1 %815 }
 0x253   :  { %v1860_v59 = vpop.permute.xlu0 %782 }
 0x254   :  { %462 = vst [vmem:[%s2188_s13 + $0x10] sm:$0xff] %v425_v29  ;;  %v470_v31 = vmul.f32 0.5, %v425_v29  ;;  %v471_v21 = vmul.f32 0.5, %v454_v30 }
 0x255   :  { %463 = vst [vmem:[%s2188_s13 + $0x18] sm:$0xff] %v454_v30 }
 0x256   :  { %v1316_v33 = vpop.eup %1315  ;;  %v476_v34 = vmul.f32 1.442695, %v470_v31  ;;  %v478_v35 = vmul.f32 1.442695, %v471_v21 }
 0x257   :  { %v1318_v36 = vpop.eup %1317  ;;  %v480_v37 = vmul.f32 %v1316_v33, %v464_v20  ;;  %v1281_v33 = vld [vmem:[%s2184_s7 + $0xb0] sm:$0xff] }
 0x258   :  { %1319 = vpow2.f32 %v476_v34  ;;  %v481_v38 = vmul.f32 %v1318_v36, %v465_v32  ;;  %v1280_v34 = vld [vmem:[%s2184_s7 + $0xa8] sm:$0xff] }
 0x259   :  { %1321 = vpow2.f32 %v478_v35  ;;  %v484_v39 = vadd.f32 %v480_v37, %v416_v12  ;;  %v1276_v36 = vld [vmem:[%s2184_s7 + $0x68] sm:$0xff] }
 0x25a   :  { %v485_v40 = vadd.f32 %v481_v38, %v445_v51  ;;  %v1850_v22 = vpop.permute.xlu2 %810  ;;  %v1870_v24 = vpop.permute.xlu1 %1061 }
 0x25b   :  { %488 = vst [vmem:[%s2190_s14] sm:$0xff] %v484_v39  ;;  %v1872_v25 = vpop.permute.xlu0 %1028 }
 0x25c   :  { %489 = vst [vmem:[%s2190_s14 + $0x8] sm:$0xff] %v485_v40 }
 0x25e   :  { %v1320_v43 = vpop.eup %1319 }
 0x25f   :  { %v1322_v44 = vpop.eup %1321  ;;  %v482_v45 = vmul.f32 %v1320_v43, %v466_v41  ;;  %v1279_v41 = vld [vmem:[%s2184_s7 + $0xa0] sm:$0xff] }
 0x260   :  { %v483_v46 = vmul.f32 %v1322_v44, %v467_v42 }
 0x261   :  { %v486_v47 = vadd.f32 %v482_v45, %v419_v16 }
 0x262   :  { %v487_v48 = vadd.f32 %v483_v46, %v448_v17  ;;  %v1868_v23 = vpop.permute.xlu2 %1056  ;;  %v1882_v26 = vpop.permute.xlu1 %1023 }
 0x263   :  { %490 = vst [vmem:[%s2190_s14 + $0x10] sm:$0xff] %v486_v47  ;;  %546 = vmatpush.msrb.mxu0 %v486_v47  ;;  %v1888_v1 = vpop.permute.xlu0 %856 }
 0x264   :  { %491 = vst [vmem:[%s2190_s14 + $0x18] sm:$0xff] %v487_v48  ;;  %575 = vmatpush.msrb.mxu1 %v487_v48 }
 0x265   :  { %547 = vmatpush.msrb.mxu0 %v484_v39 }
 0x266   :  { %576 = vmatpush.msrb.mxu1 %v485_v40  ;;  %1259 = vmatmul.msk.f32.vlgmr.msrb.gmra.mxu0 %vm130_vm8, %v492_v49  ;;  %v1275_v40 = vld [vmem:[%s2184_s7 + $0x60] sm:$0xff] }
 0x267   :  { %1263 = vmatmul.msk.f32.vlgmr.msrb.gmra.mxu1 %vm130_vm8, %v492_v49 }
 0x26a   :  { %v1880_v0 = vpop.permute.xlu2 %851  ;;  %v806_v30 = vpop.permute.xlu1 %805 }
 0x26b   :  { %v1900_v31 = vpop.permute.xlu0 %1102 }
 0x26e   :  { %1260 = vmatmul.msk.f32.gmra.mxu0 %vm130_vm8, %v493_v52 }
 0x26f   :  { %1264 = vmatmul.msk.f32.gmra.mxu1 %vm130_vm8, %v493_v52 }
 0x272   :  { %v1892_v29 = vpop.permute.xlu2 %1097  ;;  %v1908_v20 = vpop.permute.xlu1 %1051 }
 0x273   :  { %v1910_v32 = vpop.permute.xlu0 %1018 }
 0x276   :  { %1261 = vmatmul.msk.f32.gmra.mxu0 %vm130_vm8, %v494_v53 }
 0x277   :  { %1265 = vmatmul.msk.f32.gmra.mxu1 %vm130_vm8, %v494_v53 }
 0x27a   :  { %v1047_v21 = vpop.permute.xlu2 %1046  ;;  %v1014_v37 = vpop.permute.xlu1 %1013 }
 0x27b   :  { %v847_v38 = vpop.permute.xlu0 %846 }
 0x27e   :  { %1262 = vmatmul.msk.f32.gmra.mxu0 %vm130_vm8, %v495_v54 }
 0x27f   :  { %1266 = vmatmul.msk.f32.gmra.mxu1 %vm130_vm8, %v495_v54 }
 0x282   :  { %v1920_v35 = vpop.permute.xlu2 %946  ;;  %v1933_v42 = vpop.permute.xlu1 %1087 }
 0x283   :  { %v1935_v43 = vpop.permute.xlu0 %1092 }
 0x28a   :  { %v1937_v45 = vpop.permute.xlu1 %941 }
 0x28b   :  { %v1939_v47 = vpop.permute.xlu0 %979 }
 0x2e3   :  { %v549_v58 = vpop.f32.mrf.mxu0 }
 0x2e4   :  { %v1768_v60 = vadd.f32 %v549_v58, %v503_v55  ;;  %v578_v61 = vpop.f32.mrf.mxu1 }
 0x2e5   :  { %v1770_v62 = vadd.f32 %v578_v61, %v503_v55 }
 0x2e6   :  { %590 = vst [vmem:[%s2192_s10] sm:$0xff] %v1768_v60  ;;  %642 = vrot.lane.b32.xlu2 %v1768_v60, %s1324_s18  ;;  %618 = vrot.lane.b32.xlu1 %v1768_v60, %s1323_s17 }
 0x2e7   :  { %591 = vst [vmem:[%s2192_s10 + $0x8] sm:$0xff] %v1770_v62  ;;  %602 = vrot.lane.b32.xlu0 %v1770_v62, %s1323_s17 }
 0x2eb   :  { %v552_v3 = vpop.f32.mrf.mxu0 }
 0x2ec   :  { %v1788_v4 = vadd.f32 %v552_v3, %v508_v2  ;;  %v581_v50 = vpop.f32.mrf.mxu1  ;;  %v823_v3 = vmul.f32 %v806_v30, %v1768_v60 }
 0x2ed   :  { %v1790_v5 = vadd.f32 %v581_v50, %v508_v2  ;;  %v1064_v50 = vmul.f32 %v1047_v21, %v1768_v60 }
 0x2ee   :  { %592 = vst [vmem:[%s2192_s10 + $0x10] sm:$0xff] %v1788_v4  ;;  %688 = vrot.lane.b32.xlu2 %v1770_v62, %s1325_s19  ;;  %686 = vrot.lane.b32.xlu1 %v1768_v60, %s1325_s19 }
 0x2ef   :  { %593 = vst [vmem:[%s2192_s10 + $0x18] sm:$0xff] %v1790_v5  ;;  %644 = vrot.lane.b32.xlu0 %v1770_v62, %s1324_s18 }
 0x2f3   :  { %v555_v8 = vpop.f32.mrf.mxu0 }
 0x2f4   :  { %v1808_v9 = vadd.f32 %v555_v8, %v513_v7  ;;  %v584_v12 = vpop.f32.mrf.mxu1 }
 0x2f5   :  { %v1810_v51 = vadd.f32 %v584_v12, %v513_v7 }
 0x2f6   :  { %594 = vst [vmem:[%s2192_s10 + $0x20] sm:$0xff] %v1808_v9  ;;  %620 = vrot.lane.b32.xlu2 %v1788_v4, %s1323_s17  ;;  %734 = vrot.lane.b32.xlu1 %v1768_v60, %s1326_s0 }
 0x2f7   :  { %595 = vst [vmem:[%s2192_s10 + $0x28] sm:$0xff] %v1810_v51  ;;  %722 = vrot.lane.b32.xlu0 %v1770_v62, %s1326_s0 }
 0x2fb   :  { %v558_v13 = vpop.f32.mrf.mxu0 }
 0x2fc   :  { %v1828_v15 = vadd.f32 %v558_v13, %v518_v56  ;;  %v587_v16 = vpop.f32.mrf.mxu1 }
 0x2fd   :  { %v1830_v17 = vadd.f32 %v587_v16, %v518_v56 }
 0x2fe   :  { %596 = vst [vmem:[%s2192_s10 + $0x30] sm:$0xff] %v1828_v15  ;;  %648 = vrot.lane.b32.xlu2 %v1790_v5, %s1324_s18  ;;  %604 = vrot.lane.b32.xlu1 %v1790_v5, %s1323_s17 }
 0x2ff   :  { %597 = vst [vmem:[%s2192_s10 + $0x38] sm:$0xff] %v1830_v17  ;;  %690 = vrot.lane.b32.xlu0 %v1788_v4, %s1325_s19 }
 0x306   :  { %736 = vrot.lane.b32.xlu2 %v1788_v4, %s1326_s0  ;;  %646 = vrot.lane.b32.xlu1 %v1788_v4, %s1324_s18 }
 0x307   :  { %622 = vrot.lane.b32.xlu0 %v1808_v9, %s1323_s17 }
 0x30e   :  { %692 = vrot.lane.b32.xlu1 %v1790_v5, %s1325_s19  ;;  %606 = vrot.lane.b32.xlu2 %v1810_v51, %s1323_s17 }
 0x30f   :  { %650 = vrot.lane.b32.xlu0 %v1808_v9, %s1324_s18 }
 0x316   :  { %724 = vrot.lane.b32.xlu1 %v1790_v5, %s1326_s0  ;;  %694 = vrot.lane.b32.xlu2 %v1808_v9, %s1325_s19 }
 0x317   :  { %696 = vrot.lane.b32.xlu0 %v1810_v51, %s1325_s19 }
 0x31e   :  { %652 = vrot.lane.b32.xlu1 %v1810_v51, %s1324_s18  ;;  %726 = vrot.lane.b32.xlu2 %v1810_v51, %s1326_s0 }
 0x31f   :  { %738 = vrot.lane.b32.xlu0 %v1808_v9, %s1326_s0 }
 0x326   :  { %624 = vrot.lane.b32.xlu1 %v1828_v15, %s1323_s17  ;;  %654 = vrot.lane.b32.xlu2 %v1828_v15, %s1324_s18 }
 0x327   :  { %608 = vrot.lane.b32.xlu0 %v1830_v17, %s1323_s17 }
 0x32e   :  { %698 = vrot.lane.b32.xlu1 %v1828_v15, %s1325_s19  ;;  %700 = vrot.lane.b32.xlu2 %v1830_v17, %s1325_s19 }
 0x32f   :  { %656 = vrot.lane.b32.xlu0 %v1830_v17, %s1324_s18 }
 0x336   :  { %740 = vrot.lane.b32.xlu1 %v1828_v15, %s1326_s0  ;;  %974 = vperm.xlu2 %1314, %v1281_v33  }
 0x337   :  { %969 = vperm.xlu0 %1312, %v1280_v34  }
 0x33e   :  { %936 = vperm.xlu2 %1314, %v1276_v36  }
 0x33f   :  { %728 = vrot.lane.b32.xlu0 %v1830_v17, %s1326_s0 }
 0x340   :  { %v643_v39 = vpop.permute.xlu2 %642 }
 0x346   :  { %931 = vperm.xlu2 %1314, %v1275_v40  }
 0x347   :  { %964 = vperm.xlu0 %1312, %v1279_v41   ;;  %v824_v41 = vmul.f32 %v806_v30, %v1770_v62 }
 0x348   :  { %v689_v44 = vpop.permute.xlu2 %688 }
 0x350   :  { %v621_v46 = vpop.permute.xlu2 %620 }
 0x358   :  { %v649_v48 = vpop.permute.xlu2 %648  ;;  %v619_v49 = vpop.permute.xlu1 %618 }
 0x359   :  { %v603_v52 = vpop.permute.xlu0 %602 }
 0x35a   :  { %v626_v7 = vsel %vm76_vm1, %v619_v49, %v603_v52  ;;  %v638_v8 = vsel %vm76_vm1, %v603_v52, %v619_v49 }
 0x360   :  { %v737_v53 = vpop.permute.xlu2 %736  ;;  %v687_v54 = vpop.permute.xlu1 %686 }
 0x361   :  { %v645_v55 = vpop.permute.xlu0 %644  ;;  %v702_v12 = vsel %vm99_vm4, %v687_v54, %v689_v44  ;;  %v718_v13 = vsel %vm99_vm4, %v689_v44, %v687_v54  ;;  %v1065_v44 = vmul.f32 %v1047_v21, %v1770_v62 }
 0x362   :  { %v658_v56 = vsel %vm85_vm0, %v643_v39, %v645_v55  ;;  %v674_v58 = vsel %vm85_vm0, %v645_v55, %v643_v39 }
 0x363   :  { %v1953_v33 = vsel %vm1431_vm2, %v638_v8, %v658_v56  ;;  %v1957_v34 = vsel %vm1435_vm3, %v626_v7, %v674_v58 }
 0x364   :  { %v864_v56 = vmul.f32 %v847_v38, %v1953_v33  ;;  %v865_v58 = vmul.f32 %v847_v38, %v1957_v34 }
 0x368   :  { %v1943_v61 = vpop.permute.xlu2 %606  ;;  %v735_v2 = vpop.permute.xlu1 %734 }
 0x369   :  { %v723_v16 = vpop.permute.xlu0 %722 }
 0x36a   :  { %v742_v36 = vsel %vm110_vm5, %v735_v2, %v723_v16  ;;  %v754_v60 = vsel %vm110_vm5, %v723_v16, %v735_v2 }
 0x36b   :  { %v1963_v39 = vsel %vm1457_vm6, %v702_v12, %v754_v60  ;;  %v1967_v40 = vsel %vm1461_vm7, %v718_v13, %v742_v36 }
 0x36c   :  { %v790_v49 = vmul.f32 %v1786_v63, %v1963_v39  ;;  %v791_v52 = vmul.f32 %v1786_v63, %v1967_v40  ;;  %v1031_v54 = vmul.f32 %v1014_v37, %v1963_v39  ;;  %v1032_v55 = vmul.f32 %v1014_v37, %v1967_v40 }
 0x36e   :  { %v831_v2 = vadd.f32 %v823_v3, %v790_v49  ;;  %v832_v7 = vadd.f32 %v824_v41, %v791_v52  ;;  %v1979_v8 = vadd.f32 %v1065_v44, %v1032_v55  ;;  %v1981_v30 = vadd.f32 %v1064_v50, %v1031_v54 }
 0x370   :  { %v695_v62 = vpop.permute.xlu2 %694  ;;  %v605_v21 = vpop.permute.xlu1 %604  ;;  %v872_v12 = vadd.f32 %v864_v56, %v831_v2  ;;  %v873_v13 = vadd.f32 %v865_v58, %v832_v7 }
 0x371   :  { %v691_v16 = vpop.permute.xlu0 %690  ;;  %v639_v50 = vsel %vm76_vm1, %v605_v21, %v621_v46  ;;  %v627_v49 = vsel %vm76_vm1, %v621_v46, %v605_v21 }
 0x372   :  { %900 = vrot.lane.b32.xlu0 %v872_v12, %s1327_s20  ;;  %884 = vrot.lane.b32.xlu2 %v873_v13, %s1327_s20 }
 0x378   :  { %v727_v63 = vpop.permute.xlu2 %726  ;;  %v647_v37 = vpop.permute.xlu1 %646 }
 0x379   :  { %v623_v36 = vpop.permute.xlu0 %622  ;;  %v659_v41 = vsel %vm85_vm0, %v647_v37, %v649_v48  ;;  %v675_v44 = vsel %vm85_vm0, %v649_v48, %v647_v37  ;;  %v826_v37 = vmul.f32 %v1850_v22, %v1790_v5 }
 0x37a   :  { %v1993_v52 = vsel %vm1431_vm2, %v639_v50, %v659_v41  ;;  %v2003_v48 = vsel %vm1435_vm3, %v627_v49, %v675_v44 }
 0x37b   :  { %v867_v49 = vmul.f32 %v1880_v0, %v2003_v48 }
 0x380   :  { %v1985_v60 = vpop.permute.xlu2 %654  ;;  %v693_v38 = vpop.permute.xlu1 %692 }
 0x381   :  { %v651_v3 = vpop.permute.xlu0 %650  ;;  %v703_v56 = vsel %vm99_vm4, %v691_v16, %v693_v38  ;;  %v719_v58 = vsel %vm99_vm4, %v693_v38, %v691_v16  ;;  %v866_v38 = vmul.f32 %v1880_v0, %v1993_v52 }
 0x388   :  { %v1995_v54 = vpop.permute.xlu2 %700  ;;  %v725_v55 = vpop.permute.xlu1 %724 }
 0x389   :  { %v697_v2 = vpop.permute.xlu0 %696  ;;  %v743_v7 = vsel %vm110_vm5, %v737_v53, %v725_v55  ;;  %v755_v12 = vsel %vm110_vm5, %v725_v55, %v737_v53  ;;  %v825_v53 = vmul.f32 %v1850_v22, %v1788_v4  ;;  %v628_v22 = vsel %vm76_vm1, %v623_v36, %v1943_v61 }
 0x38a   :  { %v2007_v46 = vsel %vm1457_vm6, %v703_v56, %v755_v12  ;;  %v2011_v21 = vsel %vm1461_vm7, %v719_v58, %v743_v7  ;;  %v827_v58 = vmul.f32 %v1858_v57, %v1808_v9  ;;  %v640_v7 = vsel %vm76_vm1, %v1943_v61, %v623_v36 }
 0x38b   :  { %v792_v13 = vmul.f32 %v1848_v19, %v2007_v46  ;;  %v793_v16 = vmul.f32 %v1848_v19, %v2011_v21  ;;  %v1033_v41 = vmul.f32 %v1910_v32, %v2007_v46  ;;  %v1066_v19 = vmul.f32 %v1908_v20, %v1788_v4 }
 0x38c   :  { %v704_v12 = vsel %vm99_vm4, %v695_v62, %v697_v2 }
 0x38d   :  { %v833_v50 = vadd.f32 %v825_v53, %v792_v13  ;;  %v834_v44 = vadd.f32 %v826_v37, %v793_v16  ;;  %v720_v13 = vsel %vm99_vm4, %v697_v2, %v695_v62  ;;  %v1074_v4 = vadd.f32 %v1066_v19, %v1033_v41 }
 0x38f   :  { %v874_v55 = vadd.f32 %v866_v38, %v833_v50  ;;  %v875_v56 = vadd.f32 %v867_v49, %v834_v44 }
 0x390   :  { %v653_v16 = vpop.permute.xlu1 %652  ;;  %v975_v38 = vpop.permute.xlu2 %974 }
 0x391   :  { %v739_v0 = vpop.permute.xlu0 %738  ;;  %v660_v53 = vsel %vm85_vm0, %v651_v3, %v653_v16  ;;  %v676_v37 = vsel %vm85_vm0, %v653_v16, %v651_v3  ;;  %902 = vrot.lane.b32.xlu2 %v874_v55, %s1327_s20  ;;  %886 = vrot.lane.b32.xlu1 %v875_v56, %s1327_s20  ;;  %v1107_v56 = vmul.f32 %v1935_v43, %v1993_v52 }
 0x392   :  { %v744_v50 = vsel %vm110_vm5, %v739_v0, %v727_v63  ;;  %v756_v61 = vsel %vm110_vm5, %v727_v63, %v739_v0  ;;  %v682_v36 = vsel %vm1431_vm2, %v640_v7, %v660_v53  ;;  %v683_v62 = vsel %vm1435_vm3, %v628_v22, %v676_v37 }
 0x393   :  { %v762_v2 = vsel %vm1457_vm6, %v704_v12, %v756_v61  ;;  %v763_v3 = vsel %vm1461_vm7, %v720_v13, %v744_v50  ;;  %v986_v44 = vmul.f32 %v975_v38, %v682_v36  ;;  %v987_v49 = vmul.f32 %v975_v38, %v683_v62 }
 0x394   :  { %v794_v41 = vmul.f32 %v1860_v59, %v762_v2  ;;  %v953_v55 = vmul.f32 %v1937_v45, %v762_v2  ;;  %v954_v63 = vmul.f32 %v1937_v45, %v763_v3  ;;  %v1035_v19 = vmul.f32 %v1882_v26, %v762_v2 }
 0x395   :  { %v1068_v22 = vmul.f32 %v1868_v23, %v1808_v9  ;;  %v795_v7 = vmul.f32 %v1860_v59, %v763_v3  ;;  %v1115_v12 = vadd.f32 %v1107_v56, %v1074_v4  ;;  %v868_v16 = vmul.f32 %v1888_v1, %v682_v36 }
 0x396   :  { %v835_v13 = vadd.f32 %v827_v58, %v794_v41  ;;  %v1109_v53 = vmul.f32 %v1892_v29, %v682_v36  ;;  %v2062_v37 = vadd.f32 %v986_v44, %v953_v55  ;;  %v2064_v45 = vadd.f32 %v987_v49, %v954_v63 }
 0x397   :  { %v1076_v0 = vadd.f32 %v1068_v22, %v1035_v19  ;;  %v1034_v38 = vmul.f32 %v1910_v32, %v2011_v21  ;;  %v828_v59 = vmul.f32 %v1858_v57, %v1810_v51  ;;  %v1067_v58 = vmul.f32 %v1908_v20, %v1790_v5 }
 0x398   :  { %v876_v50 = vadd.f32 %v868_v16, %v835_v13  ;;  %v625_v2 = vpop.permute.xlu1 %624  ;;  %v869_v32 = vmul.f32 %v1888_v1, %v683_v62  ;;  %v1108_v44 = vmul.f32 %v1935_v43, %v2003_v48  ;;  %v1036_v49 = vmul.f32 %v1882_v26, %v763_v3  ;;  %v937_v56 = vpop.permute.xlu2 %936 }
 0x399   :  { %v609_v61 = vpop.permute.xlu0 %608  ;;  %1133 = vrot.lane.b32.xlu1 %v1115_v12, %s1328_s21  ;;  %v1117_v9 = vadd.f32 %v1109_v53, %v1076_v0  ;;  %v836_v4 = vadd.f32 %v828_v59, %v795_v7  ;;  %v1075_v36 = vadd.f32 %v1067_v58, %v1034_v38  ;;  %v1069_v5 = vmul.f32 %v1868_v23, %v1810_v51 }
 0x39a   :  { %904 = vrot.lane.b32.xlu2 %v876_v50, %s1327_s20  ;;  %v1110_v63 = vmul.f32 %v1892_v29, %v683_v62  ;;  %v951_v26 = vmul.f32 %v937_v56, %v2007_v46  ;;  %v952_v43 = vmul.f32 %v937_v56, %v2011_v21  ;;  %v629_v12 = vsel %vm76_vm1, %v625_v2, %v609_v61 }
 0x39b   :  { %1137 = vrot.lane.b32.xlu0 %v1117_v9, %s1328_s21  ;;  %v877_v41 = vadd.f32 %v869_v32, %v836_v4  ;;  %v1116_v55 = vadd.f32 %v1108_v44, %v1075_v36  ;;  %v1077_v20 = vadd.f32 %v1069_v5, %v1036_v49  ;;  %v641_v46 = vsel %vm76_vm1, %v609_v61, %v625_v2 }
 0x39c   :  { %v829_v16 = vmul.f32 %v1806_v6, %v1828_v15  ;;  %v830_v0 = vmul.f32 %v1806_v6, %v1830_v17 }
 0x39d   :  { %v1118_v19 = vadd.f32 %v1110_v63, %v1077_v20  ;;  %v1106_v63 = vmul.f32 %v1933_v42, %v1957_v34 }
 0x3a0   :  { %v699_v1 = vpop.permute.xlu1 %698 }
 0x3a1   :  { %v657_v57 = vpop.permute.xlu0 %656  ;;  %888 = vrot.lane.b32.xlu1 %v877_v41, %s1327_s20  ;;  %v721_v53 = vsel %vm99_vm4, %v1995_v54, %v699_v1 }
 0x3a2   :  { %1135 = vrot.lane.b32.xlu2 %v1116_v55, %s1328_s21  ;;  %v661_v29 = vsel %vm85_vm0, %v1985_v60, %v657_v57  ;;  %v677_v62 = vsel %vm85_vm0, %v657_v57, %v1985_v60  ;;  %v705_v60 = vsel %vm99_vm4, %v699_v1, %v1995_v54  ;;  %v932_v1 = vpop.permute.xlu2 %931 }
 0x3a3   :  { %v684_v21 = vsel %vm1431_vm2, %v641_v46, %v661_v29  ;;  %v949_v46 = vmul.f32 %v932_v1, %v1963_v39 }
 0x3a4   :  { %v988_v11 = vmul.f32 %v1939_v47, %v684_v21  ;;  %v870_v4 = vmul.f32 %v1826_v14, %v684_v21  ;;  %v1111_v5 = vmul.f32 %v1900_v31, %v684_v21 }
 0x3a9   :  { %v970_v22 = vpop.permute.xlu0 %969  ;;  %1139 = vrot.lane.b32.xlu1 %v1118_v19, %s1328_s21 }
 0x3aa   :  { %v984_v3 = vmul.f32 %v970_v22, %v1993_v52  ;;  %v985_v7 = vmul.f32 %v970_v22, %v2003_v48  ;;  %v685_v52 = vsel %vm1435_vm3, %v629_v12, %v677_v62  ;;  %v741_v48 = vpop.permute.xlu1 %740 }
 0x3ab   :  { %v989_v50 = vmul.f32 %v1939_v47, %v685_v52  ;;  %v871_v36 = vmul.f32 %v1826_v14, %v685_v52  ;;  %v1070_v14 = vmul.f32 %v1870_v24, %v1828_v15  ;;  %v1112_v57 = vmul.f32 %v1900_v31, %v685_v52 }
 0x3ac   :  { %v2089_v51 = vadd.f32 %v984_v3, %v951_v26  ;;  %v2091_v23 = vadd.f32 %v985_v7, %v952_v43  ;;  %v1114_v15 = vadd.f32 %v1106_v63, %v1979_v8 }
 0x3b1   :  { %v729_v13 = vpop.permute.xlu0 %728 }
 0x3b2   :  { %v745_v10 = vsel %vm110_vm5, %v741_v48, %v729_v13  ;;  %v757_v38 = vsel %vm110_vm5, %v729_v13, %v741_v48 }
 0x3b3   :  { %v764_v61 = vsel %vm1457_vm6, %v705_v60, %v757_v38  ;;  %v765_v6 = vsel %vm1461_vm7, %v721_v53, %v745_v10 }
 0x3b4   :  { %v796_v9 = vmul.f32 %v1846_v18, %v764_v61  ;;  %v797_v59 = vmul.f32 %v1846_v18, %v765_v6  ;;  %v955_v54 = vmul.f32 %v1920_v35, %v764_v61  ;;  %v956_v58 = vmul.f32 %v1920_v35, %v765_v6 }
 0x3b5   :  { %v1037_v44 = vmul.f32 %v1872_v25, %v764_v61  ;;  %v1038_v28 = vmul.f32 %v1872_v25, %v765_v6  ;;  %v1071_v18 = vmul.f32 %v1870_v24, %v1830_v17  ;;  %v1105_v17 = vmul.f32 %v1933_v42, %v1953_v33 }
 0x3b6   :  { %v837_v2 = vadd.f32 %v829_v16, %v796_v9  ;;  %v838_v47 = vadd.f32 %v830_v0, %v797_v59  ;;  %v996_v32 = vadd.f32 %v988_v11, %v955_v54  ;;  %v997_v27 = vadd.f32 %v989_v50, %v956_v58 }
 0x3b7   :  { %v1079_v35 = vadd.f32 %v1071_v18, %v1038_v28  ;;  %v1078_v55 = vadd.f32 %v1070_v14, %v1037_v44  ;;  %v1113_v24 = vadd.f32 %v1105_v17, %v1981_v30  ;;  %v950_v54 = vmul.f32 %v932_v1, %v1967_v40 }
 0x3b8   :  { %v878_v49 = vadd.f32 %v870_v4, %v837_v2  ;;  %v879_v41 = vadd.f32 %v871_v36, %v838_v47 }
 0x3b9   :  { %v1120_v20 = vadd.f32 %v1112_v57, %v1079_v35  ;;  %v1119_v25 = vadd.f32 %v1111_v5, %v1078_v55  ;;  %v965_v19 = vpop.permute.xlu0 %964  ;;  %v1173_v57 = vld [vmem:[%s2193_s8] sm:$0xff] }
 0x3ba   :  { %906 = vrot.lane.b32.xlu1 %v878_v49, %s1327_s20  ;;  %890 = vrot.lane.b32.xlu0 %v879_v41, %s1327_s20  ;;  %v982_v21 = vmul.f32 %v965_v19, %v1953_v33  ;;  %v983_v52 = vmul.f32 %v965_v19, %v1957_v34 }
 0x3bc   :  { %v991_v44 = vadd.f32 %v983_v52, %v950_v54 }
 0x3c2   :  { %1143 = vrot.lane.b32.xlu1 %v1120_v20, %s1328_s21  ;;  %1141 = vrot.lane.b32.xlu0 %v1119_v25, %s1328_s21 }
 0x3ca   :  { %1131 = vrot.lane.b32.xlu1 %v1114_v15, %s1328_s21  ;;  %1129 = vrot.lane.b32.xlu0 %v1113_v24, %s1328_s21 }
 0x3cc   :  { %v885_v22 = vpop.permute.xlu2 %884 }
 0x3e4   :  { %v901_v43 = vpop.permute.xlu0 %900 }
 0x3eb   :  { %v903_v3 = vpop.permute.xlu2 %902 }
 0x3f4   :  { %v905_v62 = vpop.permute.xlu2 %904 }
 0x3fc   :  { %v1136_v50 = vpop.permute.xlu2 %1135 }
 0x403   :  { %v887_v31 = vpop.permute.xlu1 %886 }
 0x404   :  { %v909_v16 = vsel %vm130_vm8, %v903_v3, %v887_v31  ;;  %v921_v0 = vsel %vm130_vm8, %v887_v31, %v903_v3 }
 0x405   :  { %v1000_v58 = vadd.f32 %v2089_v51, %v921_v0  ;;  %v1001_v2 = vadd.f32 %v2091_v23, %v909_v16 }
 0x40b   :  { %v1134_v56 = vpop.permute.xlu1 %1133 }
 0x40c   :  { %v1146_v4 = vsel %vm147_vm9, %v1134_v56, %v1136_v50  ;;  %v1162_v36 = vsel %vm147_vm9, %v1136_v50, %v1134_v56 }
 0x40d   :  { %v1138_v7 = vpop.permute.xlu0 %1137  ;;  %v1167_v28 = vadd.f32 %v1146_v4, %v1000_v58  ;;  %v1168_v40 = vadd.f32 %v1162_v36, %v1001_v2 }
 0x413   :  { %v889_v26 = vpop.permute.xlu1 %888 }
 0x414   :  { %v910_v48 = vsel %vm130_vm8, %v905_v62, %v889_v26  ;;  %v922_v13 = vsel %vm130_vm8, %v889_v26, %v905_v62 }
 0x415   :  { %v1002_v61 = vadd.f32 %v2062_v37, %v922_v13  ;;  %v1003_v6 = vadd.f32 %v2064_v45, %v910_v48  ;;  %v908_v37 = vsel %vm130_vm8, %v901_v43, %v885_v22  ;;  %v920_v45 = vsel %vm130_vm8, %v885_v22, %v901_v43 }
 0x416   :  { %v999_v49 = vadd.f32 %v991_v44, %v908_v37 }
 0x41b   :  { %v1140_v29 = vpop.permute.xlu1 %1139 }
 0x41c   :  { %v1147_v11 = vsel %vm147_vm9, %v1138_v7, %v1140_v29  ;;  %v1163_v39 = vsel %vm147_vm9, %v1140_v29, %v1138_v7 }
 0x41d   :  { %v1169_v47 = vadd.f32 %v1147_v11, %v1002_v61 }
 0x42c   :  { %v891_v42 = vpop.permute.xlu0 %890  ;;  %v907_v12 = vpop.permute.xlu1 %906 }
 0x42d   :  { %v911_v8 = vsel %vm130_vm8, %v907_v12, %v891_v42  ;;  %v923_v30 = vsel %vm130_vm8, %v891_v42, %v907_v12 }
 0x42e   :  { %v1004_v60 = vadd.f32 %v996_v32, %v923_v30  ;;  %v1005_v53 = vadd.f32 %v997_v27, %v911_v8  ;;  %v1170_v32 = vadd.f32 %v1163_v39, %v1003_v6  ;;  %v990_v27 = vadd.f32 %v982_v21, %v949_v46 }
 0x430   :  { %v998_v51 = vadd.f32 %v990_v27, %v920_v45 }
 0x434   :  { %v1142_v10 = vpop.permute.xlu0 %1141  ;;  %v1144_v38 = vpop.permute.xlu1 %1143 }
 0x435   :  { %v1148_v33 = vsel %vm147_vm9, %v1142_v10, %v1144_v38  ;;  %v1164_v34 = vsel %vm147_vm9, %v1144_v38, %v1142_v10 }
 0x436   :  { %v1171_v9 = vadd.f32 %v1148_v33, %v1004_v60  ;;  %v1172_v59 = vadd.f32 %v1164_v34, %v1005_v53 }
 0x438   :  { %1189 = vmatpush.msra.mxu2 %v1171_v9  ;;  %1209 = vmatpush.msra.mxu3 %v1172_v59 }
 0x43a   :  { %1190 = vmatpush.msra.mxu2 %v1169_v47  ;;  %1210 = vmatpush.msra.mxu3 %v1170_v32 }
 0x43c   :  { %v1130_v41 = vpop.permute.xlu0 %1129  ;;  %1191 = vmatpush.msra.mxu2 %v1167_v28  ;;  %1211 = vmatpush.msra.mxu3 %v1168_v40  ;;  %v1132_v23 = vpop.permute.xlu1 %1131 }
 0x43d   :  { %v1145_v18 = vsel %vm147_vm9, %v1130_v41, %v1132_v23  ;;  %v1161_v14 = vsel %vm147_vm9, %v1132_v23, %v1130_v41 }
 0x43e   :  { %v1165_v35 = vadd.f32 %v1145_v18, %v998_v51  ;;  %v1166_v55 = vadd.f32 %v1161_v14, %v999_v49 }
 0x440   :  { %1192 = vmatpush.msra.mxu2 %v1165_v35  ;;  %1212 = vmatpush.msra.mxu3 %v1166_v55 }
 0x441   :  { %1295 = vmatmul.msk.f32.vlgmr.msra.gmra.mxu2 %vm279_vm10, %v1173_v57  ;;  %1296 = vmatmul.msk.f32.vlgmr.msra.gmra.mxu3 %vm279_vm10, %v1173_v57 }
 0x4c4   :  { %v1194_v5 = vpop.f32.mrf.mxu2  ;;  %v1214_v20 = vpop.f32.mrf.mxu3 }
 0x4c5   :  { %1217 = vst [vmem:[%s2194_s11] sm:$0xff] %v1194_v5 }
 0x4c6   :  { %1218 = vst [vmem:[%s2194_s11 + $0x8] sm:$0xff] %v1214_v20 }

</bundles_post_ra>
